<compile_context>
chip_gen: v7x
topology: tpu7x:2x2x1
jax: 0.10.0
libtpu: 0.0.40
codegen_flags: <defaults>
</compile_context>

<pallas_src>
import jax
import jax.numpy as jnp
from jax import lax
from jax.experimental import pallas as pl
from jax.experimental.pallas import tpu as pltpu

LANE = 128  # channel padding target (TPU lane width)


# ----------------------------------------------------------------------------
# Fused Residual kernel:  out = x + LReLU(BN(conv3x3(LReLU(BN(conv1x1(x))))))
# ----------------------------------------------------------------------------
def _make_residual_kernel(H, W, CP):
    CK = 3 * CP  # conv2 contraction depth: 3 dx taps folded into K

    def kernel(x_ref, w1_ref, s1_ref, b1_ref, w2_ref, s2_ref, b2_ref, o_ref, pad_ref):
        # x_ref:   (1, H, W, CP)   bf16  channel-padded NHWC tile (one batch element)
        # w1_ref:  (CP, CP)        bf16  1x1 conv weight, (Cin, Chid) zero-padded
        # w2_ref:  (3, 3*CP, CP)   bf16  3x3 conv weight, per-dy, dx packed along K
        # s*/b*:   (1, CP)         f32   folded BatchNorm scale / bias
        # o_ref:   (1, H, W, CP)   bf16
        # pad_ref: (H+2, W, 3*CP)  bf16  scratch: rows 1..H interior, rows 0/H+1 zero halo

        # ---- CBL1: 1x1 conv (K=CP matmul) + folded BN + LeakyReLU(0.1), f32 epilogue ----
        h = jnp.dot(x_ref[0].reshape(H * W, CP), w1_ref[...],
                    preferred_element_type=jnp.float32)          # (H*W, CP)
        h = h * s1_ref[...] + b1_ref[...]
        h = jnp.where(h > 0, h, 0.1 * h)
        h3 = h.reshape(H, W, CP)

        # ---- build the dx-folded slab once: blocks [h(x-1) | h(x) | h(x+1)] ----
        # (shift along W happens once here, not 9x inside the tap loop)
        zcol = jnp.zeros((H, 1, CP), jnp.float32)
        h_xm1 = jnp.concatenate([zcol, h3[:, :W - 1, :]], axis=1)   # h(y, x-1), 0 at x=0
        h_xp1 = jnp.concatenate([h3[:, 1:, :], zcol], axis=1)       # h(y, x+1), 0 at x=W-1

        # zero ONLY the two halo rows (not the whole buffer); interior rows 1..H are
        # fully overwritten every step, so no stale data can leak across steps/cores.
        zrow = jnp.zeros((W, CK), jnp.bfloat16)
        pad_ref[0] = zrow
        pad_ref[H + 1] = zrow
        # lane-aligned 128-channel block stores (no masked / misaligned stores)
        pad_ref[pl.ds(1, H), :, pl.ds(0, CP)] = h_xm1.astype(jnp.bfloat16)
        pad_ref[pl.ds(1, H), :, pl.ds(CP, CP)] = h3.astype(jnp.bfloat16)
        pad_ref[pl.ds(1, H), :, pl.ds(2 * CP, CP)] = h_xp1.astype(jnp.bfloat16)

        # ---- CBL2: 3x3 conv = 3 contiguous dy-slices, each one deep K=3*CP matmul ----
        acc = jnp.dot(pad_ref[pl.ds(0, H)].reshape(H * W, CK), w2_ref[0],
                      preferred_element_type=jnp.float32)
        acc = acc + jnp.dot(pad_ref[pl.ds(1, H)].reshape(H * W, CK), w2_ref[1],
                            preferred_element_type=jnp.float32)
        acc = acc + jnp.dot(pad_ref[pl.ds(2, H)].reshape(H * W, CK), w2_ref[2],
                            preferred_element_type=jnp.float32)
        y = acc * s2_ref[...] + b2_ref[...]
        y = jnp.where(y > 0, y, 0.1 * y)

        # ---- residual add (f32): re-read x here (short live range), lane-dense store ----
        y = y + x_ref[0].reshape(H * W, CP).astype(jnp.float32)
        o_ref[0] = y.reshape(H, W, CP).astype(o_ref.dtype)

    return kernel


def residual_forward_padded(x_pad, kparams):
    """Residual block on the resident layout: (N, H, W, CP) bf16 in / out."""
    N, H, W, CP = x_pad.shape
    return pl.pallas_call(
        _make_residual_kernel(H, W, CP),
        out_shape=jax.ShapeDtypeStruct((N, H, W, CP), jnp.bfloat16),
        grid=(N,),
        in_specs=[
            pl.BlockSpec((1, H, W, CP), lambda n: (n, 0, 0, 0)),
            pl.BlockSpec((CP, CP), lambda n: (0, 0)),
            pl.BlockSpec((1, CP), lambda n: (0, 0)),
            pl.BlockSpec((1, CP), lambda n: (0, 0)),
            pl.BlockSpec((3, 3 * CP, CP), lambda n: (0, 0, 0)),
            pl.BlockSpec((1, CP), lambda n: (0, 0)),
            pl.BlockSpec((1, CP), lambda n: (0, 0)),
        ],
        out_specs=pl.BlockSpec((1, H, W, CP), lambda n: (n, 0, 0, 0)),
        scratch_shapes=[pltpu.VMEM((H + 2, W, 3 * CP), jnp.bfloat16)],
        compiler_params=pltpu.CompilerParams(dimension_semantics=("parallel",)),
    )(x_pad, kparams["w1"], kparams["s1"], kparams["b1"],
      kparams["w2"], kparams["s2"], kparams["b2"])


@jax.jit
def residual_forward(x_nchw, kparams):
    """NCHW f32 in / out, like the PyTorch module.

    The NCHW <-> padded-NHWC-bf16 conversions below model the ONE-TIME network
    entry/exit cost; stacked residual blocks would chain residual_forward_padded
    directly on the resident layout with no per-block transpose/pad/crop passes.
    """
    N, C, H, W = x_nchw.shape
    CP = kparams["w1"].shape[0]
    x = jnp.transpose(x_nchw, (0, 2, 3, 1))
    x = jnp.pad(x, ((0, 0), (0, 0), (0, 0), (0, CP - C))).astype(jnp.bfloat16)
    out = residual_forward_padded(x, kparams)
    return jnp.transpose(out[..., :C].astype(jnp.float32), (0, 3, 1, 2))


# ----------------------------------------------------------------------------
# Parameters: raw (PyTorch-layout) init + kernel-ready (folded/padded) transform
# ----------------------------------------------------------------------------
def init_residual_params(key, num_features):
    C = num_features
    C2 = C // 2
    ks = jax.random.split(key, 4)
    conv1_w = jax.random.normal(ks[0], (C2, C, 1, 1), jnp.float32) / jnp.sqrt(C)
    conv2_w = jax.random.normal(ks[1], (C, C2, 3, 3), jnp.float32) / jnp.sqrt(C2 * 9)

    def bn(k, n):
        k1, k2, k3, k4 = jax.random.split(k, 4)
        gamma = 1.0 + 0.1 * jax.random.normal(k1, (n,), jnp.float32)
        beta = 0.1 * jax.random.normal(k2, (n,), jnp.float32)
        mean = 0.1 * jax.random.normal(k3, (n,), jnp.float32)
        var = 1.0 + 0.1 * jnp.abs(jax.random.normal(k4, (n,), jnp.float32))
        return (gamma, beta, mean, var)

    return {"conv1_w": conv1_w, "bn1": bn(ks[2], C2),
            "conv2_w": conv2_w, "bn2": bn(ks[3], C)}


def _fold_bn(gamma, beta, mean, var, eps=1e-5):
    scale = gamma / jnp.sqrt(var + eps)
    return scale, beta - mean * scale


def prepare_kernel_params(raw, lane=LANE):
    conv1_w, conv2_w = raw["conv1_w"], raw["conv2_w"]
    C2, C = conv1_w.shape[0], conv1_w.shape[1]
    assert C <= lane and C2 <= lane

    s1, b1 = _fold_bn(*raw["bn1"])
    s2, b2 = _fold_bn(*raw["bn2"])

    # 1x1 conv: (C2, C, 1, 1) -> (Cin, Cout)=(C, C2), zero-padded to (lane, lane), bf16
    w1 = jnp.transpose(conv1_w[:, :, 0, 0], (1, 0)).astype(jnp.bfloat16)
    w1 = jnp.zeros((lane, lane), jnp.bfloat16).at[:C, :C2].set(w1)

    # 3x3 conv: (C, C2, 3, 3) -> (dy, dx, Cin, Cout); pack the 3 dx taps along K so the
    # kernel runs 3 deep (K = 3*lane) matmuls instead of 9 shallow ones.
    w2t = jnp.transpose(conv2_w, (2, 3, 1, 0)).astype(jnp.bfloat16)          # (3,3,C2,C)
    w2 = jnp.zeros((3, 3, lane, lane), jnp.bfloat16).at[:, :, :C2, :C].set(w2t)
    w2 = w2.reshape(3, 3 * lane, lane)

    def padvec(v):
        return jnp.zeros((1, lane), jnp.float32).at[0, :v.shape[0]].set(v)

    return {"w1": w1, "s1": padvec(s1), "b1": padvec(b1),
            "w2": w2, "s2": padvec(s2), "b2": padvec(b2)}


# ----------------------------------------------------------------------------
# Pure-JAX f32 reference (mirrors the PyTorch module in eval mode)
# ----------------------------------------------------------------------------
def _cbl_ref(x, w, bn, padding):
    y = lax.conv_general_dilated(x, w, window_strides=(1, 1), padding=padding,
                                 dimension_numbers=("NCHW", "OIHW", "NCHW"))
    scale, bias = _fold_bn(*bn)
    y = y * scale[None, :, None, None] + bias[None, :, None, None]
    return jnp.where(y > 0, y, 0.1 * y)


def residual_reference(x, raw):
    h = _cbl_ref(x, raw["conv1_w"], raw["bn1"], "VALID")
    h = _cbl_ref(h, raw["conv2_w"], raw["bn2"], ((1, 1), (1, 1)))
    return x + h


# ----------------------------------------------------------------------------
if __name__ == "__main__":
    key = jax.random.PRNGKey(0)
    kx, kp = jax.random.split(key)

    N, C, H, W = 2, 16, 16, 16          # num_features=16 -> hidden channels 8
    x = jax.random.normal(kx, (N, C, H, W), jnp.float32)

    raw = init_residual_params(kp, C)
    kparams = prepare_kernel_params(raw)

    out = jax.block_until_ready(residual_forward(x, kparams))

    assert out.shape == (N, C, H, W), out.shape
    assert jnp.isfinite(out).all()

    ref = residual_reference(x, raw)
    max_err = jnp.max(jnp.abs(out - ref))
    # bf16 streamed activations + bf16 matmul operands vs f32 reference
    assert jnp.allclose(out, ref, rtol=5e-2, atol=1e-1), f"max|err|={max_err}"

    print("KERNEL_OK")
</pallas_src>

<mosaic_0001>
module attributes {stable_mosaic.version = 11 : i64} {
  func.func @kernel(%arg0: i32, %arg1: memref<1x16x16x128xbf16, #tpu.memory_space<vmem>>, %arg2: memref<128x128xbf16, #tpu.memory_space<vmem>>, %arg3: memref<1x128xf32, #tpu.memory_space<vmem>>, %arg4: memref<1x128xf32, #tpu.memory_space<vmem>>, %arg5: memref<3x384x128xbf16, #tpu.memory_space<vmem>>, %arg6: memref<1x128xf32, #tpu.memory_space<vmem>>, %arg7: memref<1x128xf32, #tpu.memory_space<vmem>>, %arg8: memref<1x16x16x128xbf16, #tpu.memory_space<vmem>>, %arg9: memref<18x16x384xbf16, #tpu.memory_space<vmem>>) attributes {dimension_semantics = [#tpu.dimension_semantics<parallel>], iteration_bounds = array<i64: 2>, scalar_prefetch = 0 : i64, scratch_operands = 1 : i64, tpu.core_type = #tpu.core_type<tc>, window_params = [{transform_indices = @transform_0, window_bounds = array<i64: 1, 16, 16, 128>}, {pipeline_mode = #tpu.pipeline_mode<synchronous>, transform_indices = @transform_1, window_bounds = array<i64: 128, 128>}, {pipeline_mode = #tpu.pipeline_mode<synchronous>, transform_indices = @transform_2, window_bounds = array<i64: 1, 128>}, {pipeline_mode = #tpu.pipeline_mode<synchronous>, transform_indices = @transform_3, window_bounds = array<i64: 1, 128>}, {pipeline_mode = #tpu.pipeline_mode<synchronous>, transform_indices = @transform_4, window_bounds = array<i64: 3, 384, 128>}, {pipeline_mode = #tpu.pipeline_mode<synchronous>, transform_indices = @transform_5, window_bounds = array<i64: 1, 128>}, {pipeline_mode = #tpu.pipeline_mode<synchronous>, transform_indices = @transform_6, window_bounds = array<i64: 1, 128>}, {transform_indices = @transform_7, window_bounds = array<i64: 1, 16, 16, 128>}]} {
    %c0 = arith.constant 0 : index
    %c0_0 = arith.constant 0 : index
    %c0_1 = arith.constant 0 : index
    %c0_2 = arith.constant 0 : index
    %0 = vector.load %arg1[%c0, %c0_0, %c0_1, %c0_2] : memref<1x16x16x128xbf16, #tpu.memory_space<vmem>>, vector<1x16x16x128xbf16>
    %1 = vector.shape_cast %0 : vector<1x16x16x128xbf16> to vector<16x16x128xbf16>
    %2 = vector.shape_cast %1 : vector<16x16x128xbf16> to vector<256x128xbf16>
    %c0_3 = arith.constant 0 : index
    %c0_4 = arith.constant 0 : index
    %3 = vector.load %arg2[%c0_3, %c0_4] : memref<128x128xbf16, #tpu.memory_space<vmem>>, vector<128x128xbf16>
    %cst = arith.constant dense<0.000000e+00> : vector<256x128xf32>
    %4 = tpu.matmul %2, %3, %cst {dimension_numbers = #tpu.dot_dimension_numbers<[1], [0], [0], [1], [0, 0, 1, 1], [], []>} : vector<256x128xbf16>, vector<128x128xbf16>, vector<256x128xf32> -> vector<256x128xf32>
    %c0_5 = arith.constant 0 : index
    %c0_6 = arith.constant 0 : index
    %5 = vector.load %arg3[%c0_5, %c0_6] : memref<1x128xf32, #tpu.memory_space<vmem>>, vector<1x128xf32>
    %6 = vector.broadcast %5 : vector<1x128xf32> to vector<256x128xf32>
    %7 = arith.mulf %4, %6 : vector<256x128xf32>
    %c0_7 = arith.constant 0 : index
    %c0_8 = arith.constant 0 : index
    %8 = vector.load %arg4[%c0_7, %c0_8] : memref<1x128xf32, #tpu.memory_space<vmem>>, vector<1x128xf32>
    %9 = vector.broadcast %8 : vector<1x128xf32> to vector<256x128xf32>
    %10 = arith.addf %7, %9 : vector<256x128xf32>
    %cst_9 = arith.constant 0.000000e+00 : f32
    %11 = vector.broadcast %cst_9 : f32 to vector<256x128xf32>
    %12 = arith.cmpf ogt, %10, %11 : vector<256x128xf32>
    %cst_10 = arith.constant 1.000000e-01 : f32
    %13 = vector.broadcast %cst_10 : f32 to vector<256x128xf32>
    %14 = arith.mulf %13, %10 : vector<256x128xf32>
    %15 = arith.select %12, %10, %14 : vector<256x128xi1>, vector<256x128xf32>
    %16 = vector.shape_cast %15 : vector<256x128xf32> to vector<16x16x128xf32>
    %cst_11 = arith.constant 0.000000e+00 : f32
    %17 = vector.broadcast %cst_11 : f32 to vector<16x1x128xf32>
    %18 = vector.extract_strided_slice %16 {offsets = [0, 0, 0], sizes = [16, 15, 128], strides = [1, 1, 1]} : vector<16x16x128xf32> to vector<16x15x128xf32>
    %19 = tpu.concatenate %17, %18 in 1 : vector<16x1x128xf32>, vector<16x15x128xf32> -> vector<16x16x128xf32>
    %20 = vector.extract_strided_slice %16 {offsets = [0, 1, 0], sizes = [16, 15, 128], strides = [1, 1, 1]} : vector<16x16x128xf32> to vector<16x15x128xf32>
    %21 = tpu.concatenate %20, %17 in 1 : vector<16x15x128xf32>, vector<16x1x128xf32> -> vector<16x16x128xf32>
    %cst_12 = arith.constant 0.000000e+00 : bf16
    %22 = vector.broadcast %cst_12 : bf16 to vector<16x384xbf16>
    %c0_13 = arith.constant 0 : index
    %c0_14 = arith.constant 0 : index
    %c0_15 = arith.constant 0 : index
    %23 = vector.load %arg9[%c0_13, %c0_14, %c0_15] : memref<18x16x384xbf16, #tpu.memory_space<vmem>>, vector<1x16x384xbf16>
    %24 = vector.shape_cast %23 : vector<1x16x384xbf16> to vector<16x384xbf16>
    %25 = vector.shape_cast %22 : vector<16x384xbf16> to vector<1x16x384xbf16>
    tpu.vector_store %arg9[%c0_13, %c0_14, %c0_15], %25 {strides = array<i32>} : memref<18x16x384xbf16, #tpu.memory_space<vmem>>, vector<1x16x384xbf16>,
    %c17 = arith.constant 17 : index
    %c0_16 = arith.constant 0 : index
    %c0_17 = arith.constant 0 : index
    %26 = vector.load %arg9[%c17, %c0_16, %c0_17] : memref<18x16x384xbf16, #tpu.memory_space<vmem>>, vector<1x16x384xbf16>
    %27 = vector.shape_cast %26 : vector<1x16x384xbf16> to vector<16x384xbf16>
    %28 = vector.shape_cast %22 : vector<16x384xbf16> to vector<1x16x384xbf16>
    tpu.vector_store %arg9[%c17, %c0_16, %c0_17], %28 {strides = array<i32>} : memref<18x16x384xbf16, #tpu.memory_space<vmem>>, vector<1x16x384xbf16>,
    %29 = arith.truncf %19 : vector<16x16x128xf32> to vector<16x16x128xbf16>
    %c1 = arith.constant 1 : index
    %c0_18 = arith.constant 0 : index
    %c0_19 = arith.constant 0 : index
    %30 = vector.load %arg9[%c1, %c0_18, %c0_19] : memref<18x16x384xbf16, #tpu.memory_space<vmem>>, vector<16x16x128xbf16>
    tpu.vector_store %arg9[%c1, %c0_18, %c0_19], %29 {strides = array<i32>} : memref<18x16x384xbf16, #tpu.memory_space<vmem>>, vector<16x16x128xbf16>,
    %31 = arith.truncf %16 : vector<16x16x128xf32> to vector<16x16x128xbf16>
    %c1_20 = arith.constant 1 : index
    %c0_21 = arith.constant 0 : index
    %c128 = arith.constant 128 : index
    %32 = vector.load %arg9[%c1_20, %c0_21, %c128] : memref<18x16x384xbf16, #tpu.memory_space<vmem>>, vector<16x16x128xbf16>
    tpu.vector_store %arg9[%c1_20, %c0_21, %c128], %31 {strides = array<i32>} : memref<18x16x384xbf16, #tpu.memory_space<vmem>>, vector<16x16x128xbf16>,
    %33 = arith.truncf %21 : vector<16x16x128xf32> to vector<16x16x128xbf16>
    %c1_22 = arith.constant 1 : index
    %c0_23 = arith.constant 0 : index
    %c256 = arith.constant 256 : index
    %34 = vector.load %arg9[%c1_22, %c0_23, %c256] : memref<18x16x384xbf16, #tpu.memory_space<vmem>>, vector<16x16x128xbf16>
    tpu.vector_store %arg9[%c1_22, %c0_23, %c256], %33 {strides = array<i32>} : memref<18x16x384xbf16, #tpu.memory_space<vmem>>, vector<16x16x128xbf16>,
    %c0_24 = arith.constant 0 : index
    %c0_25 = arith.constant 0 : index
    %c0_26 = arith.constant 0 : index
    %35 = vector.load %arg9[%c0_24, %c0_25, %c0_26] : memref<18x16x384xbf16, #tpu.memory_space<vmem>>, vector<16x16x384xbf16>
    %36 = vector.shape_cast %35 : vector<16x16x384xbf16> to vector<256x384xbf16>
    %c0_27 = arith.constant 0 : index
    %c0_28 = arith.constant 0 : index
    %c0_29 = arith.constant 0 : index
    %37 = vector.load %arg5[%c0_27, %c0_28, %c0_29] : memref<3x384x128xbf16, #tpu.memory_space<vmem>>, vector<1x384x128xbf16>
    %38 = vector.shape_cast %37 : vector<1x384x128xbf16> to vector<384x128xbf16>
    %cst_30 = arith.constant dense<0.000000e+00> : vector<256x128xf32>
    %39 = tpu.matmul %36, %38, %cst_30 {dimension_numbers = #tpu.dot_dimension_numbers<[1], [0], [0], [1], [0, 0, 1, 1], [], []>} : vector<256x384xbf16>, vector<384x128xbf16>, vector<256x128xf32> -> vector<256x128xf32>
    %c1_31 = arith.constant 1 : index
    %c0_32 = arith.constant 0 : index
    %c0_33 = arith.constant 0 : index
    %40 = vector.load %arg9[%c1_31, %c0_32, %c0_33] : memref<18x16x384xbf16, #tpu.memory_space<vmem>>, vector<16x16x384xbf16>
    %41 = vector.shape_cast %40 : vector<16x16x384xbf16> to vector<256x384xbf16>
    %c1_34 = arith.constant 1 : index
    %c0_35 = arith.constant 0 : index
    %c0_36 = arith.constant 0 : index
    %42 = vector.load %arg5[%c1_34, %c0_35, %c0_36] : memref<3x384x128xbf16, #tpu.memory_space<vmem>>, vector<1x384x128xbf16>
    %43 = vector.shape_cast %42 : vector<1x384x128xbf16> to vector<384x128xbf16>
    %cst_37 = arith.constant dense<0.000000e+00> : vector<256x128xf32>
    %44 = tpu.matmul %41, %43, %cst_37 {dimension_numbers = #tpu.dot_dimension_numbers<[1], [0], [0], [1], [0, 0, 1, 1], [], []>} : vector<256x384xbf16>, vector<384x128xbf16>, vector<256x128xf32> -> vector<256x128xf32>
    %45 = arith.addf %39, %44 : vector<256x128xf32>
    %c2 = arith.constant 2 : index
    %c0_38 = arith.constant 0 : index
    %c0_39 = arith.constant 0 : index
    %46 = vector.load %arg9[%c2, %c0_38, %c0_39] : memref<18x16x384xbf16, #tpu.memory_space<vmem>>, vector<16x16x384xbf16>
    %47 = vector.shape_cast %46 : vector<16x16x384xbf16> to vector<256x384xbf16>
    %c2_40 = arith.constant 2 : index
    %c0_41 = arith.constant 0 : index
    %c0_42 = arith.constant 0 : index
    %48 = vector.load %arg5[%c2_40, %c0_41, %c0_42] : memref<3x384x128xbf16, #tpu.memory_space<vmem>>, vector<1x384x128xbf16>
    %49 = vector.shape_cast %48 : vector<1x384x128xbf16> to vector<384x128xbf16>
    %cst_43 = arith.constant dense<0.000000e+00> : vector<256x128xf32>
    %50 = tpu.matmul %47, %49, %cst_43 {dimension_numbers = #tpu.dot_dimension_numbers<[1], [0], [0], [1], [0, 0, 1, 1], [], []>} : vector<256x384xbf16>, vector<384x128xbf16>, vector<256x128xf32> -> vector<256x128xf32>
    %51 = arith.addf %45, %50 : vector<256x128xf32>
    %c0_44 = arith.constant 0 : index
    %c0_45 = arith.constant 0 : index
    %52 = vector.load %arg6[%c0_44, %c0_45] : memref<1x128xf32, #tpu.memory_space<vmem>>, vector<1x128xf32>
    %53 = vector.broadcast %52 : vector<1x128xf32> to vector<256x128xf32>
    %54 = arith.mulf %51, %53 : vector<256x128xf32>
    %c0_46 = arith.constant 0 : index
    %c0_47 = arith.constant 0 : index
    %55 = vector.load %arg7[%c0_46, %c0_47] : memref<1x128xf32, #tpu.memory_space<vmem>>, vector<1x128xf32>
    %56 = vector.broadcast %55 : vector<1x128xf32> to vector<256x128xf32>
    %57 = arith.addf %54, %56 : vector<256x128xf32>
    %cst_48 = arith.constant 0.000000e+00 : f32
    %58 = vector.broadcast %cst_48 : f32 to vector<256x128xf32>
    %59 = arith.cmpf ogt, %57, %58 : vector<256x128xf32>
    %cst_49 = arith.constant 1.000000e-01 : f32
    %60 = vector.broadcast %cst_49 : f32 to vector<256x128xf32>
    %61 = arith.mulf %60, %57 : vector<256x128xf32>
    %62 = arith.select %59, %57, %61 : vector<256x128xi1>, vector<256x128xf32>
    %c0_50 = arith.constant 0 : index
    %c0_51 = arith.constant 0 : index
    %c0_52 = arith.constant 0 : index
    %c0_53 = arith.constant 0 : index
    %63 = vector.load %arg1[%c0_50, %c0_51, %c0_52, %c0_53] : memref<1x16x16x128xbf16, #tpu.memory_space<vmem>>, vector<1x16x16x128xbf16>
    %64 = vector.shape_cast %63 : vector<1x16x16x128xbf16> to vector<16x16x128xbf16>
    %65 = vector.shape_cast %64 : vector<16x16x128xbf16> to vector<256x128xbf16>
    %66 = arith.extf %65 : vector<256x128xbf16> to vector<256x128xf32>
    %67 = arith.addf %62, %66 : vector<256x128xf32>
    %68 = vector.shape_cast %67 : vector<256x128xf32> to vector<16x16x128xf32>
    %69 = arith.truncf %68 : vector<16x16x128xf32> to vector<16x16x128xbf16>
    %c0_54 = arith.constant 0 : index
    %c0_55 = arith.constant 0 : index
    %c0_56 = arith.constant 0 : index
    %c0_57 = arith.constant 0 : index
    %70 = vector.load %arg8[%c0_54, %c0_55, %c0_56, %c0_57] : memref<1x16x16x128xbf16, #tpu.memory_space<vmem>>, vector<1x16x16x128xbf16>
    %71 = vector.shape_cast %70 : vector<1x16x16x128xbf16> to vector<16x16x128xbf16>
    %72 = vector.shape_cast %69 : vector<16x16x128xbf16> to vector<1x16x16x128xbf16>
    tpu.vector_store %arg8[%c0_54, %c0_55, %c0_56, %c0_57], %72 {strides = array<i32>} : memref<1x16x16x128xbf16, #tpu.memory_space<vmem>>, vector<1x16x16x128xbf16>,
    return
  }
  func.func @transform_0(%arg0: i32) -> (i32, i32, i32, i32) {
    %c0_i32 = arith.constant 0 : i32
    %c0_i32_0 = arith.constant 0 : i32
    %c0_i32_1 = arith.constant 0 : i32
    %c0_i32_2 = arith.constant 0 : i32
    return %arg0, %c0_i32, %c0_i32_0, %c0_i32_1 : i32, i32, i32, i32
  }
  func.func @transform_1(%arg0: i32) -> (i32, i32) {
    %c0_i32 = arith.constant 0 : i32
    %c0_i32_0 = arith.constant 0 : i32
    %c0_i32_1 = arith.constant 0 : i32
    return %c0_i32, %c0_i32_0 : i32, i32
  }
  func.func @transform_2(%arg0: i32) -> (i32, i32) {
    %c0_i32 = arith.constant 0 : i32
    %c0_i32_0 = arith.constant 0 : i32
    %c0_i32_1 = arith.constant 0 : i32
    return %c0_i32, %c0_i32_0 : i32, i32
  }
  func.func @transform_3(%arg0: i32) -> (i32, i32) {
    %c0_i32 = arith.constant 0 : i32
    %c0_i32_0 = arith.constant 0 : i32
    %c0_i32_1 = arith.constant 0 : i32
    return %c0_i32, %c0_i32_0 : i32, i32
  }
  func.func @transform_4(%arg0: i32) -> (i32, i32, i32) {
    %c0_i32 = arith.constant 0 : i32
    %c0_i32_0 = arith.constant 0 : i32
    %c0_i32_1 = arith.constant 0 : i32
    %c0_i32_2 = arith.constant 0 : i32
    return %c0_i32, %c0_i32_0, %c0_i32_1 : i32, i32, i32
  }
  func.func @transform_5(%arg0: i32) -> (i32, i32) {
    %c0_i32 = arith.constant 0 : i32
    %c0_i32_0 = arith.constant 0 : i32
    %c0_i32_1 = arith.constant 0 : i32
    return %c0_i32, %c0_i32_0 : i32, i32
  }
  func.func @transform_6(%arg0: i32) -> (i32, i32) {
    %c0_i32 = arith.constant 0 : i32
    %c0_i32_0 = arith.constant 0 : i32
    %c0_i32_1 = arith.constant 0 : i32
    return %c0_i32, %c0_i32_0 : i32, i32
  }
  func.func @transform_7(%arg0: i32) -> (i32, i32, i32, i32) {
    %c0_i32 = arith.constant 0 : i32
    %c0_i32_0 = arith.constant 0 : i32
    %c0_i32_1 = arith.constant 0 : i32
    %c0_i32_2 = arith.constant 0 : i32
    return %arg0, %c0_i32, %c0_i32_0, %c0_i32_1 : i32, i32, i32, i32
  }
}

</mosaic_0001>

<bundles_post_ra>
// kernel: residual_forward.1
= control target key start
LH: loop header
LB: loop body
LE: loop exit
PB: predicated region body
PF: predicated region fallthrough
CT: control target
= control target key end

     0   :  { %s5052_s24 = smov 0   ;;  %s6604_s0 = inlined_call_operand.vmem [shape: bf16[2,16,16,128], index: 0, kind: input, shape index: {}]   ;;  %s6605_s1 = inlined_call_operand.vmem [shape: bf16[128,128], index: 1, kind: input, shape index: {}]   ;;  %s6606_s2 = inlined_call_operand.vmem [shape: f32[1,128], index: 2, kind: input, shape index: {}]   ;;  %s6607_s3 = inlined_call_operand.vmem [shape: f32[1,128], index: 3, kind: input, shape index: {}]   ;;  %s6608_s4 = inlined_call_operand.vmem [shape: bf16[3,384,128], index: 4, kind: input, shape index: {}]   ;;  %s6609_s5 = inlined_call_operand.vmem [shape: f32[1,128], index: 5, kind: input, shape index: {}]   ;;  %s6610_s6 = inlined_call_operand.vmem [shape: f32[1,128], index: 6, kind: input, shape index: {}]   ;;  %s6611_s7 = inlined_call_operand.vmem [shape: bf16[2,16,16,128], index: 7, kind: output, shape index: {}]  }
   0x1 LB: > { %s3343_s25 = sadd.s32 4294967295, %s5008_s24   ;;  %p3347_p0 = scmp.ge.s32.totalorder %s5008_s24, 1  ;;  %s5008_s24 = sphi %s5052_s24, %s17_s24  }
   0x2   : > { %p237_p1 = scmp.lt.s32.totalorder %s5008_s24, 3 }
   0x4   : > { %p238_p2 = pnand %p3347_p0, %p237_p1 }
   0x6   : > { %241 = sbr.rel (%p238_p2) target bundleno = 826 (0x33a), region = 48 }
   0xd   : > { %v4906_v0 = vld [vmem:[%s6605_s1] sm:$0xff]   ;;  %p269_p3 = scmp.lt.s32.totalorder %s3343_s25, 1  ;;  %v4907_v1 = vld [vmem:[%s6605_s1 + $0x8] sm:$0xff]   ;;  %v4908_v2 = vld [vmem:[%s6605_s1 + $0x10] sm:$0xff]   ;;  %vm839_vm3 = vcmask 1040384   ;;  %vm936_vm5 = vcmask 1046528  }
   0xe   : > { %4544 = vmatprep.subr.bf16.mxu1 %v4906_v0  ;;  %v4909_v3 = vld [vmem:[%s6605_s1 + $0x18] sm:$0xff]   ;;  %v4910_v5 = vld [vmem:[%s6605_s1 + $0x20] sm:$0xff]   ;;  %v4911_v6 = vld [vmem:[%s6605_s1 + $0x28] sm:$0xff]   ;;  %vm5010_vm8 = vmmov 1  }
   0xf   : > { %s6672_s25 = smov (!%p269_p3, %s3343_s25), 1  ;;  %4545 = vmatpush3.bf16.msra.mxu1 %v4906_v0  ;;  %v4912_v7 = vld [vmem:[%s6605_s1 + $0x30] sm:$0xff]   ;;  %v4913_v8 = vld [vmem:[%s6605_s1 + $0x38] sm:$0xff]   ;;  %v4931_v9 = vld [vmem:[%s6608_s4 + $0x140] sm:$0xff]  }
  0x10   : > { %4546 = vmatprep.subr.bf16.mxu1 %v4907_v1  ;;  %s3582_s9 = sshll.u32 %s6672_s25, 7  ;;  %v4930_v10 = vld [vmem:[%s6608_s4 + $0x100] sm:$0xff]   ;;  %4592 = vmatprep.subr.bf16.mxu0 %v4931_v9  ;;  %v4934_v12 = vld [vmem:[%s6608_s4 + $0x148] sm:$0xff]   ;;  %v4937_v15 = vld [vmem:[%s6608_s4 + $0x150] sm:$0xff]  }
  0x11   : > { %s5077_s12 = scalar_lea.vmem %s6604_s0, %s3582_s9  ;;  %4593 = vmatpush3.bf16.msra.mxu0 %v4931_v9  ;;  %v4932_v14 = vld [vmem:[%s6608_s4 + $0xc0] sm:$0xff]   ;;  %v4933_v16 = vld [vmem:[%s6608_s4 + $0x108] sm:$0xff]   ;;  %v4940_v18 = vld [vmem:[%s6608_s4 + $0x158] sm:$0xff]   ;;  %s6427_s27 = scalar_lea.vmem %s6611_s7, %s3582_s9 }
  0x12   : > { %v4914_v4 = vld [vmem:[%s5077_s12] sm:$0xff]   ;;  %v4915_v11 = vld [vmem:[%s5077_s12 + $0x8] sm:$0xff]   ;;  %v4916_v13 = vld [vmem:[%s5077_s12 + $0x10] sm:$0xff]   ;;  %4594 = vmatprep.subr.bf16.mxu0 %v4934_v12 }
  0x13   : > { %4547 = vmatpush3.bf16.msra.mxu1 %v4907_v1  ;;  %4560 = vmatprep.mubr.bf16.mxu1 %v4914_v4  ;;  %v4935_v17 = vld [vmem:[%s6608_s4 + $0xc8] sm:$0xff]   ;;  %v4936_v19 = vld [vmem:[%s6608_s4 + $0x110] sm:$0xff]   ;;  %v4917_v20 = vld [vmem:[%s5077_s12 + $0x18] sm:$0xff]  }
  0x14   : > { %4548 = vmatprep.subr.bf16.mxu1 %v4908_v2  ;;  %v4918_v21 = vld [vmem:[%s5077_s12 + $0x20] sm:$0xff]   ;;  %v4938_v22 = vld [vmem:[%s6608_s4 + $0xd0] sm:$0xff]   ;;  %v4939_v23 = vld [vmem:[%s6608_s4 + $0x118] sm:$0xff]  }
  0x15   : > { %4595 = vmatpush3.bf16.msra.mxu0 %v4934_v12  ;;  %v4941_v24 = vld [vmem:[%s6608_s4 + $0xd8] sm:$0xff]   ;;  %v4919_v25 = vld [vmem:[%s5077_s12 + $0x28] sm:$0xff]   ;;  %v4920_v26 = vld [vmem:[%s5077_s12 + $0x30] sm:$0xff]  }
  0x16   : > { %4596 = vmatprep.subr.bf16.mxu0 %v4937_v15  ;;  %v4921_v27 = vld [vmem:[%s5077_s12 + $0x38] sm:$0xff]   ;;  %v4922_v28 = vld [vmem:[%s5077_s12 + $0x40] sm:$0xff]   ;;  %v4923_v29 = vld [vmem:[%s5077_s12 + $0x48] sm:$0xff]  }
  0x17   : > { %4549 = vmatpush3.bf16.msra.mxu1 %v4908_v2  ;;  %v4924_v30 = vld [vmem:[%s5077_s12 + $0x50] sm:$0xff]   ;;  %v4925_v31 = vld [vmem:[%s5077_s12 + $0x58] sm:$0xff]   ;;  %v4926_v32 = vld [vmem:[%s5077_s12 + $0x60] sm:$0xff]  }
  0x18   : > { %4550 = vmatprep.subr.bf16.mxu1 %v4909_v3  ;;  %v4927_v33 = vld [vmem:[%s5077_s12 + $0x68] sm:$0xff]   ;;  %v4928_v34 = vld [vmem:[%s5077_s12 + $0x70] sm:$0xff]   ;;  %v4929_v35 = vld [vmem:[%s5077_s12 + $0x78] sm:$0xff]  }
  0x19   : > { %4597 = vmatpush3.bf16.msra.mxu0 %v4937_v15  ;;  %v4942_v36 = vld [vmem:[%s6608_s4 + $0x120] sm:$0xff]   ;;  %v4945_v39 = vld [vmem:[%s6608_s4 + $0x128] sm:$0xff]   ;;  %v4948_v42 = vld [vmem:[%s6608_s4 + $0x130] sm:$0xff]  }
  0x1a   : > { %4598 = vmatprep.subr.bf16.mxu0 %v4940_v18  ;;  %v4943_v37 = vld [vmem:[%s6608_s4 + $0x160] sm:$0xff]   ;;  %v4946_v40 = vld [vmem:[%s6608_s4 + $0x168] sm:$0xff]   ;;  %v4949_v43 = vld [vmem:[%s6608_s4 + $0x170] sm:$0xff]  }
  0x1b   : > { %4551 = vmatpush3.bf16.msra.mxu1 %v4909_v3  ;;  %v4944_v38 = vld [vmem:[%s6608_s4 + $0xe0] sm:$0xff]   ;;  %v4947_v41 = vld [vmem:[%s6608_s4 + $0xe8] sm:$0xff]   ;;  %v4950_v44 = vld [vmem:[%s6608_s4 + $0xf0] sm:$0xff]  }
  0x1c   : > { %4552 = vmatprep.subr.bf16.mxu1 %v4910_v5  ;;  %v4951_v45 = vld [vmem:[%s6608_s4 + $0x138] sm:$0xff]   ;;  %v4954_v48 = vld [vmem:[%s6608_s4 + $0x40] sm:$0xff]   ;;  %vm5214_vm6 = vmneg %vm839_vm3 }
  0x1d   : > { %4599 = vmatpush3.bf16.msra.mxu0 %v4940_v18  ;;  %v4952_v46 = vld [vmem:[%s6608_s4 + $0x178] sm:$0xff]   ;;  %v4970_v49 = vld [vmem:[%s6608_s4 + $0x1c0] sm:$0xff]   ;;  %vm5231_vm9 = vmpackc.low %vm5010_vm8, %vm5214_vm6 }
  0x1e   : > { %4600 = vmatprep.subr.bf16.mxu0 %v4943_v37  ;;  %v4953_v47 = vld [vmem:[%s6608_s4 + $0xf8] sm:$0xff]   ;;  %v5191_v50 = vld [vmem:[%s6606_s2] ss:$0 sm:$0xff]  ;;  %vm5260_vm13 = vmpackc.low %vm936_vm5, %vm5010_vm8 }
  0x1f   : > { %4553 = vmatpush3.bf16.msra.mxu1 %v4910_v5  ;;  %v5196_v52 = vld [vmem:[%s6607_s3] ss:$0 sm:$0xff] }
  0x20   : > { %4554 = vmatprep.subr.bf16.mxu1 %v4911_v6 }
  0x21   : > { %4601 = vmatpush3.bf16.msra.mxu0 %v4943_v37 }
  0x22   : > { %4602 = vmatprep.subr.bf16.mxu0 %v4946_v40 }
  0x23   : > { %4555 = vmatpush3.bf16.msra.mxu1 %v4911_v6 }
  0x24   : > { %4556 = vmatprep.subr.bf16.mxu1 %v4912_v7 }
  0x25   : > { %4603 = vmatpush3.bf16.msra.mxu0 %v4946_v40 }
  0x26   : > { %4604 = vmatprep.subr.bf16.mxu0 %v4949_v43 }
  0x27   : > { %4557 = vmatpush3.bf16.msra.mxu1 %v4912_v7 }
  0x28   : > { %4558 = vmatprep.subr.bf16.mxu1 %v4913_v8 }
  0x29   : > { %4605 = vmatpush3.bf16.msra.mxu0 %v4949_v43 }
  0x2a   : > { %4606 = vmatprep.subr.bf16.mxu0 %v4952_v46 }
  0x2b   : > { %4559 = vmatpush3.bf16.msra.mxu1 %v4913_v8 }
  0x2c   : > { %4136 = vmatprep.subr.bf16.mxu1 %v4930_v10 }
  0x2d   : > { %4607 = vmatpush3.bf16.msra.mxu0 %v4952_v46 }
  0x2e   : > { %4561 = vmatmul.mubr.bf16.vlgmr.msra.gmra.mrb[0].mxu1 %v4915_v11  ;;  %4272 = vmatprep.subr.bf16.mxu0 %v4954_v48 }
  0x2f   : > { %4564 = vmatprep.mubr.bf16.mxu1 %v4916_v13  ;;  %4137 = vmatpush3.bf16.msra.mxu1 %v4932_v14 }
  0x30   : > { %4138 = vmatprep.subr.bf16.mxu1 %v4933_v16 }
  0x33   : > { %4139 = vmatpush3.bf16.msra.mxu1 %v4935_v17 }
  0x34   : > { %4140 = vmatprep.subr.bf16.mxu1 %v4936_v19 }
  0x36   : > { %4565 = vmatmul.mubr.bf16.gmra.mrb[4].mxu1 %v4917_v20 }
  0x37   : > { %4568 = vmatprep.mubr.bf16.mxu1 %v4918_v21  ;;  %4141 = vmatpush3.bf16.msra.mxu1 %v4938_v22 }
  0x38   : > { %4142 = vmatprep.subr.bf16.mxu1 %v4939_v23 }
  0x3b   : > { %4143 = vmatpush3.bf16.msra.mxu1 %v4941_v24 }
  0x3c   : > { %4144 = vmatprep.subr.bf16.mxu1 %v4942_v36 }
  0x3e   : > { %4569 = vmatmul.mubr.bf16.gmra.mrb[8].mxu1 %v4919_v25 }
  0x3f   : > { %4572 = vmatprep.mubr.bf16.mxu1 %v4920_v26  ;;  %4145 = vmatpush3.bf16.msra.mxu1 %v4944_v38 }
  0x40   : > { %4146 = vmatprep.subr.bf16.mxu1 %v4945_v39 }
  0x43   : > { %4147 = vmatpush3.bf16.msra.mxu1 %v4947_v41 }
  0x44   : > { %4148 = vmatprep.subr.bf16.mxu1 %v4948_v42 }
  0x46   : > { %4573 = vmatmul.mubr.bf16.gmra.mrb[12].mxu1 %v4921_v27 }
  0x47   : > { %4576 = vmatprep.mubr.bf16.mxu1 %v4922_v28  ;;  %4149 = vmatpush3.bf16.msra.mxu1 %v4950_v44 }
  0x48   : > { %4150 = vmatprep.subr.bf16.mxu1 %v4951_v45 }
  0x4b   : > { %4151 = vmatpush3.bf16.msra.mxu1 %v4953_v47 }
  0x4c   : > { %4408 = vmatprep.subr.bf16.mxu1 %v4970_v49 }
  0x4e   : > { %4577 = vmatmul.mubr.bf16.gmra.mrb[16].mxu1 %v4923_v29 }
  0x4f   : > { %4580 = vmatprep.mubr.bf16.mxu1 %v4924_v30  ;;  %v4971_v30 = vld [vmem:[%s6608_s4 + $0x180] sm:$0xff]  }
  0x56   : > { %4581 = vmatmul.mubr.bf16.gmra.mrb[20].mxu1 %v4925_v31 }
  0x57   : > { %4584 = vmatprep.mubr.bf16.mxu1 %v4926_v32 }
  0x5e   : > { %4585 = vmatmul.mubr.bf16.gmra.mrb[24].mxu1 %v4927_v33 }
  0x5f   : > { %4588 = vmatprep.mubr.bf16.mxu1 %v4928_v34  ;;  %v4973_v34 = vld [vmem:[%s6608_s4 + $0x1c8] sm:$0xff]  }
  0x66   : > { %4589 = vmatmul.mubr.bf16.gmra.mrb[28].mxu1 %v4929_v35 }
 0x101   : > { %v4562_v51 = vpop.f32.mrb[0].mxu1 }
 0x102   : > { %v642_v53 = vmul.f32 %v4562_v51, %v5191_v50  ;;  %v506_v54 = vpop.f32.mrb[1].mxu1 }
 0x103   : > { %v640_v55 = vmul.f32 %v5191_v50, %v506_v54  ;;  %v4563_v56 = vpop.f32.mrb[2].mxu1 }
 0x104   : > { %v681_v57 = vadd.f32 %v5196_v52, %v642_v53  ;;  %v643_v58 = vmul.f32 %v4563_v56, %v5191_v50  ;;  %v509_v59 = vpop.f32.mrb[3].mxu1 }
 0x105   : > { %v679_v60 = vadd.f32 %v5196_v52, %v640_v55  ;;  %v641_v61 = vmul.f32 %v5191_v50, %v509_v59  ;;  %v4974_v55 = vld [vmem:[%s6608_s4 + $0x188] sm:$0xff]  }
 0x106   : > { %vm713_vm0 = vcmp.gt.f32.partialorder %v681_v57, 0.0  ;;  %v745_v62 = vmul.f32 0.1, %v681_v57  ;;  %v682_v63 = vadd.f32 %v5196_v52, %v643_v58 }
 0x107   : > { %vm711_vm1 = vcmp.gt.f32.partialorder %v679_v60, 0.0  ;;  %v743_v0 = vmul.f32 0.1, %v679_v60  ;;  %v680_v1 = vadd.f32 %v5196_v52, %v641_v61 }
 0x108   : > { %vm714_vm2 = vcmp.gt.f32.partialorder %v682_v63, 0.0  ;;  %v746_v2 = vmul.f32 0.1, %v682_v63  ;;  %v5206_v3 = vsel %vm713_vm0, %v681_v57, %v745_v62  ;;  %v4976_v62 = vld [vmem:[%s6608_s4 + $0x1d0] sm:$0xff]  }
 0x109   : > { %vm712_vm4 = vcmp.gt.f32.partialorder %v680_v1, 0.0  ;;  %v744_v4 = vmul.f32 0.1, %v680_v1  ;;  %v4566_v5 = vpop.f32.mrb[4].mxu1  ;;  %v775_v6 = vsel %vm711_vm1, %v679_v60, %v743_v0  ;;  %v843_v10 = vrot.slane %v5206_v3, 7  ;;  %v4955_v60 = vld [vmem:[%s6608_s4] sm:$0xff]  }
 0x10a   : > { %v646_v7 = vmul.f32 %v4566_v5, %v5191_v50  ;;  %v522_v8 = vpop.f32.mrb[5].mxu1  ;;  %v5209_v9 = vsel %vm714_vm2, %v682_v63, %v746_v2  ;;  %v840_v14 = vrot.slane %v775_v6, 7  ;;  %v937_v16 = vrot.slane %v775_v6, 1 }
 0x10b   : > { %v644_v11 = vmul.f32 %v5191_v50, %v522_v8  ;;  %v4567_v12 = vpop.f32.mrb[6].mxu1  ;;  %v776_v13 = vsel %vm712_vm4, %v680_v1, %v744_v4  ;;  %v941_v25 = vrot.slane %v5209_v9, 1  ;;  %v844_v40 = vrot.slane %v5209_v9, 7  ;;  %v4956_v4 = vld [vmem:[%s6608_s4 + $0x48] sm:$0xff]  }
 0x10c   : > { %v685_v17 = vadd.f32 %v5196_v52, %v646_v7  ;;  %v647_v18 = vmul.f32 %v4567_v12, %v5191_v50  ;;  %v525_v19 = vpop.f32.mrb[7].mxu1  ;;  %v841_v20 = vrot.slane %v776_v13, 7  ;;  %v5220_v21 = vpack.c.bf16 %v776_v13, %v775_v6 }
 0x10d   : > { %v683_v22 = vadd.f32 %v5196_v52, %v644_v11  ;;  %v645_v23 = vmul.f32 %v5191_v50, %v525_v19  ;;  %v938_v24 = vrot.slane %v776_v13, 1  ;;  %v940_v41 = vrot.slane %v5206_v3, 1 }
 0x10e   : > { %vm717_vm7 = vcmp.gt.f32.partialorder %v685_v17, 0.0  ;;  %v749_v26 = vmul.f32 0.1, %v685_v17  ;;  %v686_v27 = vadd.f32 %v5196_v52, %v647_v18  ;;  %v842_v28 = vsel %vm839_vm3, %v840_v14, %v841_v20  ;;  %1506 = vmatprep.mubr.bf16.mxu1 %v5220_v21 }
 0x10f   : > { %vm715_vm10 = vcmp.gt.f32.partialorder %v683_v22, 0.0  ;;  %v747_v31 = vmul.f32 0.1, %v683_v22  ;;  %v684_v32 = vadd.f32 %v5196_v52, %v645_v23  ;;  %v5239_v33 = vpack.c.bf16 %v842_v28, %v840_v14 }
 0x110   : > { %v5244_v35 = vsel %vm717_vm7, %v685_v17, %v749_v26  ;;  %vm718_vm11 = vcmp.gt.f32.partialorder %v686_v27, 0.0  ;;  %v750_v36 = vmul.f32 0.1, %v686_v27  ;;  %v939_v37 = vsel %vm936_vm5, %v937_v16, %v938_v24  ;;  %v4957_v16 = vld [vmem:[%s6608_s4 + $0x8] sm:$0xff]  }
 0x111   : > { %v5247_v38 = vsel %vm715_vm10, %v683_v22, %v747_v31  ;;  %vm716_vm12 = vcmp.gt.f32.partialorder %v684_v32, 0.0  ;;  %v4570_v39 = vpop.f32.mrb[8].mxu1  ;;  %3793 = vmatmul.mubr.msk.bf16.vlgmr.msra.gmra.mrb[32].mxu1 %vm5231_vm9, %v5239_v33  ;;  %v849_v42 = vrot.slane %v5244_v35, 7  ;;  %v946_v43 = vrot.slane %v5244_v35, 1  ;;  %v4958_v22 = vld [vmem:[%s6608_s4 + $0x50] sm:$0xff]  }
 0x112   : > { %v5256_v44 = vsel %vm718_vm11, %v686_v27, %v750_v36  ;;  %v748_v45 = vmul.f32 0.1, %v684_v32  ;;  %v538_v47 = vpop.f32.mrb[9].mxu1  ;;  %4409 = vmatpush3.bf16.msra.mxu1 %v4971_v30  ;;  %v846_v48 = vrot.slane %v5247_v38, 7  ;;  %v943_v49 = vrot.slane %v5247_v38, 1  ;;  %v4979_v27 = vld [vmem:[%s6608_s4 + $0x1d8] sm:$0xff]  }
 0x113   : > { %v650_v51 = vmul.f32 %v4570_v39, %v5191_v50  ;;  %v5267_v53 = vpack.c.bf16 %v938_v24, %v939_v37  ;;  %v4571_v54 = vpop.f32.mrb[10].mxu1  ;;  %4410 = vmatprep.subr.bf16.mxu1 %v4973_v34  ;;  %v648_v57 = vmul.f32 %v5191_v50, %v538_v47  ;;  %v5278_v58 = vpack.c.bf16 %v5209_v9, %v5206_v3  ;;  %v4977_v3 = vld [vmem:[%s6608_s4 + $0x190] sm:$0xff]  }
 0x114   : > { %v5273_v56 = vsel %vm716_vm12, %v684_v32, %v748_v45  ;;  %v942_v59 = vsel %vm936_vm5, %v940_v41, %v941_v25  ;;  %v541_v61 = vpop.f32.mrb[11].mxu1  ;;  %v947_v63 = vrot.slane %v5256_v44, 1  ;;  %v651_v6 = vmul.f32 %v4571_v54, %v5191_v50  ;;  %v4959_v41 = vld [vmem:[%s6608_s4 + $0x10] sm:$0xff]   ;;  %v4980_v45 = vld [vmem:[%s6608_s4 + $0x198] sm:$0xff]  }
 0x115   : > { %v944_v0 = vrot.slane %v5273_v56, 1  ;;  %v689_v1 = vadd.f32 %v5196_v52, %v650_v51  ;;  %4608 = vmatprep.mubr.msk.bf16.mxu0 %vm5260_vm13, %v5267_v53  ;;  %v5293_v2 = vpack.c.bf16 %v941_v25, %v942_v59  ;;  %v687_v5 = vadd.f32 %v5196_v52, %v648_v57  ;;  %1514 = vmatprep.mubr.bf16.mxu1 %v5278_v58  ;;  %v4960_v54 = vld [vmem:[%s6608_s4 + $0x58] sm:$0xff]  }
 0x116   : > { %v649_v7 = vmul.f32 %v5191_v50, %v541_v61  ;;  %v845_v8 = vsel %vm839_vm3, %v843_v10, %v844_v40  ;;  %4411 = vmatpush3.bf16.msra.mxu1 %v4974_v55  ;;  %v690_v14 = vadd.f32 %v5196_v52, %v651_v6  ;;  %v5331_v20 = vpack.c.bf16 %v5273_v56, %v5247_v38  ;;  %v4982_v55 = vld [vmem:[%s6608_s4 + $0x1e0] sm:$0xff]   ;;  %v4961_v6 = vld [vmem:[%s6608_s4 + $0x18] sm:$0xff]  }
 0x117   : > { %vm721_vm14 = vcmp.gt.f32.partialorder %v689_v1, 0.0  ;;  %v753_v9 = vmul.f32 0.1, %v689_v1  ;;  %4609 = vmatmul.mubr.msk.bf16.vlgmr.msra.gmra.mrb[0].mxu0 %vm5260_vm13, %v5293_v2  ;;  %v5310_v11 = vpack.c.bf16 %v845_v8, %v843_v10  ;;  %v945_v12 = vsel %vm936_vm5, %v943_v49, %v944_v0  ;;  %4412 = vmatprep.subr.bf16.mxu1 %v4976_v62 }
 0x118   : > { %vm719_vm15 = vcmp.gt.f32.partialorder %v687_v5, 0.0  ;;  %v751_v13 = vmul.f32 0.1, %v687_v5  ;;  %4273 = vmatpush3.bf16.msra.mxu0 %v4955_v60  ;;  %v688_v15 = vadd.f32 %v5196_v52, %v649_v7  ;;  %v850_v10 = vrot.slane %v5256_v44, 7  ;;  %v4962_v7 = vld [vmem:[%s6608_s4 + $0x60] sm:$0xff]  }
 0x119   : > { %v5322_v17 = vsel %vm721_vm14, %v689_v1, %v753_v9  ;;  %v4574_v18 = vpop.f32.mrb[12].mxu1  ;;  %3797 = vmatmul.mubr.msk.bf16.gmra.mrb[36].mxu1 %vm5231_vm9, %v5310_v11  ;;  %v5327_v19 = vpack.c.bf16 %v944_v0, %v945_v12  ;;  %4274 = vmatprep.subr.bf16.mxu0 %v4956_v4  ;;  %v847_v23 = vrot.slane %v5273_v56, 7  ;;  %vm722_vm0 = vcmp.gt.f32.partialorder %v690_v14, 0.0 }
 0x11a   : > { %v855_v24 = vrot.slane %v5322_v17, 7  ;;  %v5339_v25 = vsel %vm719_vm15, %v687_v5, %v751_v13  ;;  %v554_v26 = vpop.f32.mrb[13].mxu1  ;;  %v952_v28 = vrot.slane %v5322_v17, 1  ;;  %v754_v31 = vmul.f32 0.1, %v690_v14  ;;  %1522 = vmatprep.mubr.bf16.mxu1 %v5331_v20  ;;  %4413 = vmatpush3.bf16.msra.mxu1 %v4977_v3 }
 0x11b   : > { %v852_v30 = vrot.slane %v5339_v25, 7  ;;  %vm720_vm1 = vcmp.gt.f32.partialorder %v688_v15, 0.0  ;;  %4612 = vmatprep.mubr.msk.bf16.mxu0 %vm5260_vm13, %v5327_v19  ;;  %v4575_v32 = vpop.f32.mrb[14].mxu1  ;;  %v752_v34 = vmul.f32 0.1, %v688_v15  ;;  %v654_v36 = vmul.f32 %v4574_v18, %v5191_v50  ;;  %4414 = vmatprep.subr.bf16.mxu1 %v4979_v27  ;;  %v4984_v27 = vld [vmem:[%s6608_s4 + $0x1e8] sm:$0xff]  }
 0x11c   : > { %v652_v37 = vmul.f32 %v5191_v50, %v554_v26  ;;  %v948_v39 = vsel %vm936_vm5, %v946_v43, %v947_v63  ;;  %4275 = vmatpush3.bf16.msra.mxu0 %v4957_v16  ;;  %v557_v40 = vpop.f32.mrb[15].mxu1  ;;  %v5362_v47 = vsel %vm722_vm0, %v690_v14, %v754_v31  ;;  %v655_v51 = vmul.f32 %v4575_v32, %v5191_v50  ;;  %v4983_v16 = vld [vmem:[%s6608_s4 + $0x1a0] sm:$0xff]  }
 0x11d   : > { %v5364_v49 = vpack.c.bf16 %v947_v63, %v948_v39  ;;  %v653_v43 = vmul.f32 %v5191_v50, %v557_v40  ;;  %4276 = vmatprep.subr.bf16.mxu0 %v4958_v22  ;;  %v949_v56 = vrot.slane %v5339_v25, 1  ;;  %v856_v57 = vrot.slane %v5362_v47, 7 }
 0x11e   : > { %v5377_v59 = vsel %vm720_vm1, %v688_v15, %v752_v34  ;;  %v693_v60 = vadd.f32 %v5196_v52, %v654_v36  ;;  %v953_v61 = vrot.slane %v5362_v47, 1  ;;  %v691_v63 = vadd.f32 %v5196_v52, %v652_v37  ;;  %4415 = vmatpush3.bf16.msra.mxu1 %v4980_v45  ;;  %v4963_v45 = vld [vmem:[%s6608_s4 + $0x20] sm:$0xff]  }
 0x11f   : > { %v950_v62 = vrot.slane %v5377_v59, 1  ;;  %4613 = vmatmul.mubr.msk.bf16.gmra.mrb[4].mxu0 %vm5260_vm13, %v5364_v49  ;;  %v694_v0 = vadd.f32 %v5196_v52, %v655_v51  ;;  %v692_v4 = vadd.f32 %v5196_v52, %v653_v43  ;;  %v848_v5 = vsel %vm839_vm3, %v846_v48, %v847_v23  ;;  %4416 = vmatprep.subr.bf16.mxu1 %v4982_v55 }
 0x120   : > { %vm725_vm2 = vcmp.gt.f32.partialorder %v693_v60, 0.0  ;;  %v757_v1 = vmul.f32 0.1, %v693_v60  ;;  %4277 = vmatpush3.bf16.msra.mxu0 %v4959_v41  ;;  %vm723_vm4 = vcmp.gt.f32.partialorder %v691_v63, 0.0  ;;  %v755_v8 = vmul.f32 0.1, %v691_v63 }
 0x121   : > { %vm726_vm6 = vcmp.gt.f32.partialorder %v694_v0, 0.0  ;;  %v758_v9 = vmul.f32 0.1, %v694_v0  ;;  %4278 = vmatprep.subr.bf16.mxu0 %v4960_v54  ;;  %vm724_vm7 = vcmp.gt.f32.partialorder %v692_v4, 0.0  ;;  %v756_v13 = vmul.f32 0.1, %v692_v4 }
 0x122   : > { %v5397_v12 = vsel %vm725_vm2, %v693_v60, %v757_v1  ;;  %v4578_v14 = vpop.f32.mrb[16].mxu1  ;;  %v5401_v15 = vpack.c.bf16 %v848_v5, %v846_v48  ;;  %v853_v3 = vrot.slane %v5377_v59, 7  ;;  %v5408_v22 = vsel %vm723_vm4, %v691_v63, %v755_v8  ;;  %4417 = vmatpush3.bf16.msra.mxu1 %v4983_v16 }
 0x123   : > { %v5410_v23 = vsel %vm726_vm6, %v694_v0, %v758_v9  ;;  %v570_v26 = vpop.f32.mrb[17].mxu1  ;;  %v958_v38 = vrot.slane %v5397_v12, 1  ;;  %v955_v31 = vrot.slane %v5408_v22, 1  ;;  %v5423_v36 = vsel %vm724_vm7, %v692_v4, %v756_v13  ;;  %4418 = vmatprep.subr.bf16.mxu1 %v4984_v27 }
 0x124   : > { %3801 = vmatmul.mubr.msk.bf16.gmra.mrb[40].mxu1 %vm5231_vm9, %v5401_v15  ;;  %v4579_v34 = vpop.f32.mrb[18].mxu1  ;;  %4279 = vmatpush3.bf16.msra.mxu0 %v4961_v6  ;;  %v658_v37 = vmul.f32 %v4578_v14, %v5191_v50  ;;  %v951_v39 = vsel %vm936_vm5, %v949_v56, %v950_v62  ;;  %v656_v40 = vmul.f32 %v5191_v50, %v570_v26  ;;  %v959_v51 = vrot.slane %v5410_v23, 1  ;;  %v4965_v6 = vld [vmem:[%s6608_s4 + $0x28] sm:$0xff]   ;;  %v4966_v14 = vld [vmem:[%s6608_s4 + $0x70] sm:$0xff]  }
 0x125   : > { %v573_v41 = vpop.f32.mrb[19].mxu1  ;;  %4280 = vmatprep.subr.bf16.mxu0 %v4962_v7  ;;  %v956_v43 = vrot.slane %v5423_v36, 1  ;;  %v5433_v54 = vpack.c.bf16 %v950_v62, %v951_v39  ;;  %v5437_v55 = vpack.c.bf16 %v5256_v44, %v5244_v35  ;;  %v954_v63 = vsel %vm936_vm5, %v952_v28, %v953_v61  ;;  %v4964_v62 = vld [vmem:[%s6608_s4 + $0x68] sm:$0xff]   ;;  %v4967_v35 = vld [vmem:[%s6608_s4 + $0x30] sm:$0xff]  }
 0x126   : > { %v697_v56 = vadd.f32 %v5196_v52, %v658_v37  ;;  %v695_v60 = vadd.f32 %v5196_v52, %v656_v40  ;;  %v659_v0 = vmul.f32 %v4579_v34, %v5191_v50  ;;  %v5453_v4 = vpack.c.bf16 %v953_v61, %v954_v63 }
 0x127   : > { %4616 = vmatprep.mubr.msk.bf16.mxu0 %vm5260_vm13, %v5433_v54  ;;  %1530 = vmatprep.mubr.bf16.mxu1 %v5437_v55  ;;  %v657_v5 = vmul.f32 %v5191_v50, %v573_v41  ;;  %v851_v28 = vsel %vm839_vm3, %v849_v42, %v850_v10  ;;  %v957_v13 = vsel %vm936_vm5, %v955_v31, %v956_v43  ;;  %v5552_v31 = vld [vmem:[%s6608_s4 + $0x80] sm:$0xff]  }
 0x128   : > { %vm729_vm8 = vcmp.gt.f32.partialorder %v697_v56, 0.0  ;;  %v761_v7 = vmul.f32 0.1, %v697_v56  ;;  %vm727_vm10 = vcmp.gt.f32.partialorder %v695_v60, 0.0  ;;  %v759_v8 = vmul.f32 0.1, %v695_v60  ;;  %4281 = vmatpush3.bf16.msra.mxu0 %v4963_v45 }
 0x129   : > { %4617 = vmatmul.mubr.msk.bf16.gmra.mrb[8].mxu0 %vm5260_vm13, %v5453_v4  ;;  %v698_v61 = vadd.f32 %v5196_v52, %v659_v0  ;;  %v696_v44 = vadd.f32 %v5196_v52, %v657_v5  ;;  %v4582_v9 = vpop.f32.mrb[20].mxu1  ;;  %v5471_v10 = vpack.c.bf16 %v851_v28, %v849_v42  ;;  %v5482_v34 = vpack.c.bf16 %v956_v43, %v957_v13  ;;  %v4985_v42 = vld [vmem:[%s6608_s4 + $0x1a8] sm:$0xff]   ;;  %v4986_v43 = vld [vmem:[%s6608_s4 + $0x1f0] sm:$0xff]   ;;  %v4968_v13 = vld [vmem:[%s6608_s4 + $0x78] sm:$0xff]  }
 0x12a   : > { %v5477_v16 = vsel %vm729_vm8, %v697_v56, %v761_v7  ;;  %v5479_v26 = vsel %vm727_vm10, %v695_v60, %v759_v8  ;;  %v662_v27 = vmul.f32 %v4582_v9, %v5191_v50  ;;  %v586_v37 = vpop.f32.mrb[21].mxu1  ;;  %4282 = vmatprep.subr.bf16.mxu0 %v4964_v62  ;;  %v5507_v62 = vpack.c.bf16 %v5377_v59, %v5339_v25 }
 0x12b   : > { %v964_v39 = vrot.slane %v5477_v16, 1  ;;  %v961_v41 = vrot.slane %v5479_v26, 1  ;;  %v4583_v45 = vpop.f32.mrb[22].mxu1  ;;  %vm730_vm11 = vcmp.gt.f32.partialorder %v698_v61, 0.0  ;;  %v762_v56 = vmul.f32 0.1, %v698_v61  ;;  %4620 = vmatprep.mubr.msk.bf16.mxu0 %vm5260_vm13, %v5482_v34  ;;  %4419 = vmatpush3.bf16.msra.mxu1 %v4985_v42 }
 0x12c   : > { %3805 = vmatmul.mubr.msk.bf16.gmra.mrb[44].mxu1 %vm5231_vm9, %v5471_v10  ;;  %vm728_vm12 = vcmp.gt.f32.partialorder %v696_v44, 0.0  ;;  %v760_v60 = vmul.f32 0.1, %v696_v44  ;;  %4283 = vmatpush3.bf16.msra.mxu0 %v4965_v6  ;;  %v701_v63 = vadd.f32 %v5196_v52, %v662_v27  ;;  %v660_v0 = vmul.f32 %v5191_v50, %v586_v37  ;;  %v589_v28 = vpop.f32.mrb[23].mxu1  ;;  %v4987_v27 = vld [vmem:[%s6608_s4 + $0x1b0] sm:$0xff]  }
 0x12d   : > { %v960_v5 = vsel %vm936_vm5, %v958_v38, %v959_v51  ;;  %4284 = vmatprep.subr.bf16.mxu0 %v4966_v14  ;;  %v5512_v7 = vsel %vm730_vm11, %v698_v61, %v762_v56  ;;  %v663_v6 = vmul.f32 %v4583_v45, %v5191_v50  ;;  %1538 = vmatprep.mubr.bf16.mxu1 %v5507_v62  ;;  %v4988_v14 = vld [vmem:[%s6608_s4 + $0x1f8] sm:$0xff]  }
 0x12e   : > { %v5514_v8 = vsel %vm728_vm12, %v696_v44, %v760_v60  ;;  %v5516_v9 = vpack.c.bf16 %v959_v51, %v960_v5  ;;  %v965_v61 = vrot.slane %v5512_v7, 1  ;;  %4420 = vmatprep.subr.bf16.mxu1 %v4986_v43  ;;  %vm733_vm14 = vcmp.gt.f32.partialorder %v701_v63, 0.0  ;;  %v4969_v60 = vld [vmem:[%s6608_s4 + $0x38] sm:$0xff]  }
 0x12f   : > { %v962_v51 = vrot.slane %v5514_v8, 1  ;;  %v765_v37 = vmul.f32 0.1, %v701_v63  ;;  %v699_v42 = vadd.f32 %v5196_v52, %v660_v0  ;;  %v702_v45 = vadd.f32 %v5196_v52, %v663_v6  ;;  %4421 = vmatpush3.bf16.msra.mxu1 %v4987_v27 }
 0x130   : > { %4285 = vmatpush3.bf16.msra.mxu0 %v4967_v35  ;;  %v661_v43 = vmul.f32 %v5191_v50, %v589_v28  ;;  %v854_v0 = vsel %vm839_vm3, %v852_v30, %v853_v3  ;;  %4422 = vmatprep.subr.bf16.mxu1 %v4988_v14 }
 0x131   : > { %v4586_v56 = vpop.f32.mrb[24].mxu1  ;;  %4621 = vmatmul.mubr.msk.bf16.gmra.mrb[12].mxu0 %vm5260_vm13, %v5516_v9  ;;  %v963_v35 = vsel %vm936_vm5, %v961_v41, %v962_v51  ;;  %v5554_v38 = vsel %vm733_vm14, %v701_v63, %v765_v37  ;;  %vm731_vm15 = vcmp.gt.f32.partialorder %v699_v42, 0.0  ;;  %v763_v28 = vmul.f32 0.1, %v699_v42  ;;  %4286 = vmatprep.subr.bf16.mxu0 %v4968_v13  ;;  %v4989_v63 = vld [vmem:[%s6608_s4 + $0x1b8] sm:$0xff]  }
 0x132   : > { %v666_v5 = vmul.f32 %v4586_v56, %v5191_v50  ;;  %v602_v6 = vpop.f32.mrb[25].mxu1  ;;  %vm734_vm0 = vcmp.gt.f32.partialorder %v702_v45, 0.0  ;;  %v766_v40 = vmul.f32 0.1, %v702_v45  ;;  %v700_v41 = vadd.f32 %v5196_v52, %v661_v43 }
 0x133   : > { %v4587_v56 = vpop.f32.mrb[26].mxu1  ;;  %v5562_v37 = vsel %vm731_vm15, %v699_v42, %v763_v28  ;;  %v5567_v13 = vpack.c.bf16 %v854_v0, %v852_v30  ;;  %v5569_v27 = vpack.c.bf16 %v962_v51, %v963_v35  ;;  %v5588_v51 = vpack.c.bf16 %v5362_v47, %v5322_v17  ;;  %4423 = vmatpush3.bf16.msra.mxu1 %v4989_v63 }
 0x134   : > { %v605_v44 = vpop.f32.mrb[27].mxu1  ;;  %v705_v18 = vadd.f32 %v5196_v52, %v666_v5  ;;  %4287 = vmatpush3.bf16.msra.mxu0 %v4969_v60  ;;  %v967_v43 = vrot.slane %v5562_v37, 1  ;;  %v5574_v14 = vsel %vm734_vm0, %v702_v45, %v766_v40  ;;  %vm732_vm1 = vcmp.gt.f32.partialorder %v700_v41, 0.0 }
 0x135   : > { %6628 = vst [vmem:[#allocation3_spill] sm:$0xff] %v5569_v27  ;;  %4640 = vmatprep.subr.bf16.mxu0 %v5552_v31  ;;  %v971_v5 = vrot.slane %v5574_v14, 1  ;;  %v764_v25 = vmul.f32 0.1, %v700_v41  ;;  %3809 = vmatmul.mubr.msk.bf16.gmra.mrb[48].mxu1 %vm5231_vm9, %v5567_v13  ;;  %v664_v40 = vmul.f32 %v5191_v50, %v602_v6  ;;  %v966_v45 = vsel %vm936_vm5, %v964_v39, %v965_v61 }
 0x136   : > { %vm737_vm2 = vcmp.gt.f32.partialorder %v705_v18, 0.0  ;;  %4624 = vmatprep.mubr.msk.bf16.mxu0 %vm5260_vm13, %v5569_v27  ;;  %v769_v30 = vmul.f32 0.1, %v705_v18  ;;  %v5595_v0 = vpack.c.bf16 %v965_v61, %v966_v45  ;;  %v667_v35 = vmul.f32 %v4587_v56, %v5191_v50  ;;  %1546 = vmatprep.mubr.bf16.mxu1 %v5588_v51 }
 0x137   : > { %v5593_v60 = vsel %vm732_vm1, %v700_v41, %v764_v25  ;;  %v665_v28 = vmul.f32 %v5191_v50, %v605_v44  ;;  %v703_v48 = vadd.f32 %v5196_v52, %v664_v40  ;;  %v6634_v47 = vrot.slane %v5408_v22, 7 }
 0x138   : > { %6629 = vst [vmem:[#allocation4_spill] sm:$0xff] %v5595_v0  ;;  %v968_v59 = vrot.slane %v5593_v60, 1  ;;  %v5601_v32 = vsel %vm737_vm2, %v705_v18, %v769_v30  ;;  %v706_v44 = vadd.f32 %v5196_v52, %v667_v35  ;;  %v857_v30 = vsel %vm839_vm3, %v855_v24, %v856_v57 }
 0x139   : > { %v4590_v42 = vpop.f32.mrb[28].mxu1  ;;  %v976_v61 = vrot.slane %v5601_v32, 1  ;;  %4625 = vmatmul.mubr.msk.bf16.gmra.mrb[16].mxu0 %vm5260_vm13, %v5595_v0  ;;  %v704_v56 = vadd.f32 %v5196_v52, %v665_v28  ;;  %vm735_vm4 = vcmp.gt.f32.partialorder %v703_v48, 0.0  ;;  %v767_v18 = vmul.f32 0.1, %v703_v48 }
 0x13a   : > { %v618_v39 = vpop.f32.mrb[29].mxu1  ;;  %v670_v25 = vmul.f32 %v4590_v42, %v5191_v50  ;;  %vm738_vm6 = vcmp.gt.f32.partialorder %v706_v44, 0.0  ;;  %v770_v45 = vmul.f32 0.1, %v706_v44  ;;  %v5623_v28 = vpack.c.bf16 %v857_v30, %v855_v24 }
 0x13b   : > { %v4591_v63 = vpop.f32.mrb[30].mxu1  ;;  %vm736_vm7 = vcmp.gt.f32.partialorder %v704_v56, 0.0  ;;  %v768_v41 = vmul.f32 0.1, %v704_v56  ;;  %v5618_v6 = vsel %vm735_vm4, %v703_v48, %v767_v18  ;;  %v969_v42 = vsel %vm936_vm5, %v967_v43, %v968_v59 }
 0x13c   : > { %v621_v40 = vpop.f32.mrb[31].mxu1  ;;  %v709_v35 = vadd.f32 %v5196_v52, %v670_v25  ;;  %v973_v1 = vrot.slane %v5618_v6, 1  ;;  %v5628_v57 = vsel %vm738_vm6, %v706_v44, %v770_v45  ;;  %v5639_v43 = vpack.c.bf16 %v968_v59, %v969_v42 }
 0x13d   : > { %v5630_v3 = vsel %vm736_vm7, %v704_v56, %v768_v41  ;;  %v977_v48 = vrot.slane %v5628_v57, 1  ;;  %3813 = vmatmul.mubr.msk.bf16.gmra.mrb[52].mxu1 %vm5231_vm9, %v5623_v28  ;;  %v668_v44 = vmul.f32 %v5191_v50, %v618_v39  ;;  %v5644_v41 = vpack.c.bf16 %v5423_v36, %v5408_v22 }
 0x13e   : > { %v974_v17 = vrot.slane %v5630_v3, 1  ;;  %vm741_vm8 = vcmp.gt.f32.partialorder %v709_v35, 0.0  ;;  %v773_v24 = vmul.f32 0.1, %v709_v35  ;;  %6630 = vst [vmem:[#allocation5_spill] sm:$0xff] %v5639_v43  ;;  %v6631_v56 = vrot.slane %v5554_v38, 1  ;;  %4628 = vmatprep.mubr.msk.bf16.mxu0 %vm5260_vm13, %v5639_v43 }
 0x13f   : > { %v671_v30 = vmul.f32 %v4591_v63, %v5191_v50  ;;  %v669_v45 = vmul.f32 %v5191_v50, %v621_v40  ;;  %v707_v59 = vadd.f32 %v5196_v52, %v668_v44  ;;  %v6633_v42 = vrot.slane %v5423_v36, 7  ;;  %1554 = vmatprep.mubr.bf16.mxu1 %v5644_v41 }
 0x140   : > { %v972_v25 = vsel %vm936_vm5, %v6631_v56, %v971_v5  ;;  %v5651_v0 = vsel %vm741_vm8, %v709_v35, %v773_v24  ;;  %v6635_v36 = vmov %v6634_v47 }
 0x141   : > { %v5657_v39 = vpack.c.bf16 %v971_v5, %v972_v25  ;;  %v860_v56 = vsel %vm839_vm3, %v6634_v47, %v6633_v42  ;;  %v982_v50 = vrot.slane %v5651_v0, 1  ;;  %v710_v40 = vadd.f32 %v5196_v52, %v671_v30 }
 0x142   : > { %v708_v35 = vadd.f32 %v5196_v52, %v669_v45  ;;  %vm739_vm10 = vcmp.gt.f32.partialorder %v707_v59, 0.0  ;;  %v771_v24 = vmul.f32 0.1, %v707_v59  ;;  %v5674_v5 = vpack.c.bf16 %v860_v56, %v6635_v36 }
 0x143   : > { %6632 = vst [vmem:[#allocation6_spill] sm:$0xff] %v5657_v39  ;;  %4629 = vmatmul.mubr.msk.bf16.gmra.mrb[20].mxu0 %vm5260_vm13, %v5657_v39  ;;  %v975_v47 = vsel %vm936_vm5, %v973_v1, %v974_v17  ;;  %vm742_vm11 = vcmp.gt.f32.partialorder %v710_v40, 0.0  ;;  %v774_v44 = vmul.f32 0.1, %v710_v40  ;;  %v5681_v52 = vpack.c.bf16 %v5410_v23, %v5397_v12 }
 0x144   : > { %vm740_vm12 = vcmp.gt.f32.partialorder %v708_v35, 0.0  ;;  %v772_v25 = vmul.f32 0.1, %v708_v35  ;;  %v803_v42 = vsel %vm739_vm10, %v707_v59, %v771_v24  ;;  %v5677_v30 = vpack.c.bf16 %v974_v17, %v975_v47 }
 0x145   : > { %v978_v45 = vsel %vm936_vm5, %v976_v61, %v977_v48  ;;  %v882_v63 = vrot.slane %v803_v42, 7  ;;  %v979_v18 = vrot.slane %v803_v42, 1  ;;  %v806_v22 = vsel %vm742_vm11, %v710_v40, %v774_v44  ;;  %3817 = vmatmul.mubr.msk.bf16.gmra.mrb[56].mxu1 %vm5231_vm9, %v5674_v5 }
 0x146   : > { %6636 = vst [vmem:[#allocation7_spill] sm:$0xff] %v5677_v30  ;;  %v804_v56 = vsel %vm740_vm12, %v708_v35, %v772_v25  ;;  %v886_v1 = vrot.slane %v806_v22, 7  ;;  %v983_v36 = vrot.slane %v806_v22, 1  ;;  %4632 = vmatprep.mubr.msk.bf16.mxu0 %vm5260_vm13, %v5677_v30  ;;  %1562 = vmatprep.mubr.bf16.mxu1 %v5681_v52  ;;  %v5691_v17 = vpack.c.bf16 %v977_v48, %v978_v45 }
 0x147   : > { %v883_v39 = vrot.slane %v804_v56, 7  ;;  %v980_v59 = vrot.slane %v804_v56, 1  ;;  %v6637_v61 = vrot.slane %v5410_v23, 7  ;;  %v6638_v40 = vrot.slane %v5397_v12, 7 }
 0x148   : > { %v5700_v24 = vpack.c.bf16 %v5514_v8, %v5479_v26  ;;  %v6639_v47 = vrot.slane %v5514_v8, 7  ;;  %v6640_v44 = vrot.slane %v5479_v26, 7  ;;  %v984_v45 = vsel %vm936_vm5, %v982_v50, %v983_v36 }
 0x149   : > { %v863_v35 = vsel %vm839_vm3, %v6638_v40, %v6637_v61  ;;  %v6641_v30 = vmov %v6638_v40  ;;  %v981_v23 = vsel %vm936_vm5, %v979_v18, %v980_v59  ;;  %v5719_v27 = vpack.c.bf16 %v983_v36, %v984_v45 }
 0x14a   : > { %v866_v25 = vsel %vm839_vm3, %v6640_v44, %v6639_v47  ;;  %v5709_v48 = vpack.c.bf16 %v863_v35, %v6641_v30  ;;  %v6642_v61 = vmov %v6640_v44  ;;  %v5717_v43 = vpack.c.bf16 %v980_v59, %v981_v23 }
 0x14b   : > { %v5715_v40 = vpack.c.bf16 %v866_v25, %v6642_v61  ;;  %v5723_v8 = vpack.c.bf16 %v5512_v7, %v5477_v16  ;;  %v6643_v12 = vrot.slane %v5512_v7, 7  ;;  %v6644_v30 = vrot.slane %v5477_v16, 7  ;;  %4633 = vmatmul.mubr.msk.bf16.gmra.mrb[24].mxu0 %vm5260_vm13, %v5691_v17 }
 0x14c   : > { %v5739_v36 = vpack.c.bf16 %v5593_v60, %v5562_v37  ;;  %v6646_v59 = vrot.slane %v5593_v60, 7  ;;  %v6647_v7 = vrot.slane %v5562_v37, 7  ;;  %v5748_v47 = vpack.c.bf16 %v5574_v14, %v5554_v38  ;;  %4636 = vmatprep.mubr.msk.bf16.mxu0 %vm5260_vm13, %v5717_v43 }
 0x14d   : > { %v869_v18 = vsel %vm839_vm3, %v6644_v30, %v6643_v12  ;;  %v6645_v26 = vmov %v6644_v30  ;;  %v6649_v25 = vrot.slane %v5574_v14, 7  ;;  %v6650_v60 = vrot.slane %v5554_v38, 7  ;;  %3821 = vmatmul.mubr.msk.bf16.gmra.mrb[60].mxu1 %vm5231_vm9, %v5709_v48 }
 0x14e   : > { %v5735_v50 = vpack.c.bf16 %v869_v18, %v6645_v26  ;;  %v872_v35 = vsel %vm839_vm3, %v6647_v7, %v6646_v59  ;;  %v6648_v16 = vmov %v6647_v7  ;;  %v5764_v45 = vpack.c.bf16 %v5630_v3, %v5618_v6  ;;  %1570 = vmatprep.mubr.bf16.mxu1 %v5700_v24 }
 0x14f   : > { %v5755_v44 = vpack.c.bf16 %v872_v35, %v6648_v16  ;;  %v875_v23 = vsel %vm839_vm3, %v6650_v60, %v6649_v25  ;;  %v6651_v61 = vrot.slane %v5630_v3, 7  ;;  %v6652_v12 = vrot.slane %v5618_v6, 7 }
 0x150   : > { %v6653_v37 = vmov %v6650_v60  ;;  %v5781_v59 = vpack.c.bf16 %v5628_v57, %v5601_v32  ;;  %v6655_v7 = vrot.slane %v5628_v57, 7  ;;  %v6656_v3 = vrot.slane %v5601_v32, 7 }
 0x151   : > { %v878_v30 = vsel %vm839_vm3, %v6652_v12, %v6651_v61  ;;  %v5773_v18 = vpack.c.bf16 %v875_v23, %v6653_v37  ;;  %v6654_v14 = vmov %v6652_v12  ;;  %v5795_v6 = vpack.c.bf16 %v804_v56, %v803_v42  ;;  %v4981_v42 = vld [vmem:[%s6608_s4 + $0x98] sm:$0xff]   ;;  %v4994_v56 = vld [vmem:[%s6608_s4 + $0x200] sm:$0xff]  }
 0x152   : > { %v5777_v26 = vpack.c.bf16 %v878_v30, %v6654_v14  ;;  %v881_v35 = vsel %vm839_vm3, %v6656_v3, %v6655_v7  ;;  %v6657_v38 = vmov %v6656_v3  ;;  %v884_v25 = vsel %vm839_vm3, %v882_v63, %v883_v39  ;;  %v6660_v37 = vld [vmem:[#allocation3_spill] sm:$0xff] }
 0x153   : > { %v5793_v16 = vpack.c.bf16 %v881_v35, %v6657_v38  ;;  %v5799_v60 = vpack.c.bf16 %v806_v22, %v5651_v0  ;;  %v5802_v57 = vpack.c.bf16 %v884_v25, %v882_v63  ;;  %v6658_v23 = vrot.slane %v5651_v0, 7  ;;  %4637 = vmatmul.mubr.msk.bf16.gmra.mrb[28].mxu0 %vm5260_vm13, %v5719_v27  ;;  %v4975_v63 = vld [vmem:[%s6608_s4 + $0x88] sm:$0xff]   ;;  %v4978_v0 = vld [vmem:[%s6608_s4 + $0x90] sm:$0xff]   ;;  %v4993_v22 = vld [vmem:[%s6608_s4 + $0xb8] sm:$0xff]  }
 0x154   : > { %v5011_v39 = vmov 0   ;;  %v6662_v38 = vld [vmem:[#allocation5_spill] sm:$0xff] }
 0x155   : > { %v887_v61 = vsel %vm839_vm3, %v6658_v23, %v886_v1  ;;  %v6659_v12 = vmov %v6658_v23  ;;  %1972 = vmatprep.mubr.bf16.mxu0 %v5011_v39  ;;  %3825 = vmatmul.mubr.msk.bf16.gmra.mrb[64].mxu1 %vm5231_vm9, %v5715_v40  ;;  %v6664_v23 = vld [vmem:[#allocation7_spill] sm:$0xff] }
 0x156   : > { %v5809_v32 = vpack.c.bf16 %v887_v61, %v6659_v12  ;;  %1578 = vmatprep.mubr.bf16.mxu1 %v5723_v8 }
 0x15b   : > { %1973 = vmatmul.mubr.bf16.vlgmr.msra.gmra.mrb[32].mxu0 %v5011_v39 }
 0x15c   : > { %4641 = vmatpush3.bf16.msra.mxu0 %v5552_v31  ;;  %1980 = vmatprep.mubr.bf16.mxu0 %v5220_v21  ;;  %v4990_v21 = vld [vmem:[%s6608_s4 + $0xa0] sm:$0xff]   ;;  %v4992_v31 = vld [vmem:[%s6608_s4 + $0xb0] sm:$0xff]  }
 0x15d   : > { %4642 = vmatprep.subr.bf16.mxu0 %v4975_v63  ;;  %3829 = vmatmul.mubr.msk.bf16.gmra.mrb[68].mxu1 %vm5231_vm9, %v5735_v50 }
 0x15e   : > { %1586 = vmatprep.mubr.bf16.mxu1 %v5739_v36 }
 0x160   : > { %4643 = vmatpush3.bf16.msra.mxu0 %v4975_v63 }
 0x161   : > { %4644 = vmatprep.subr.bf16.mxu0 %v4978_v0 }
 0x163   : > { %3905 = vmatmul.mubr.msk.bf16.gmra.mrb[36].mxu0 %vm5231_vm9, %v5239_v33  ;;  %v4991_v33 = vld [vmem:[%s6608_s4 + $0xa8] sm:$0xff]  }
 0x164   : > { %1988 = vmatprep.mubr.bf16.mxu0 %v5278_v58  ;;  %4645 = vmatpush3.bf16.msra.mxu0 %v4978_v0 }
 0x165   : > { %4646 = vmatprep.subr.bf16.mxu0 %v4981_v42  ;;  %3833 = vmatmul.mubr.msk.bf16.gmra.mrb[72].mxu1 %vm5231_vm9, %v5755_v44 }
 0x166   : > { %1594 = vmatprep.mubr.bf16.mxu1 %v5748_v47 }
 0x168   : > { %4647 = vmatpush3.bf16.msra.mxu0 %v4981_v42 }
 0x169   : > { %4648 = vmatprep.subr.bf16.mxu0 %v4990_v21 }
 0x16b   : > { %3909 = vmatmul.mubr.msk.bf16.gmra.mrb[40].mxu0 %vm5231_vm9, %v5310_v11 }
 0x16c   : > { %1996 = vmatprep.mubr.bf16.mxu0 %v5331_v20  ;;  %4649 = vmatpush3.bf16.msra.mxu0 %v4990_v21 }
 0x16d   : > { %4650 = vmatprep.subr.bf16.mxu0 %v4991_v33  ;;  %3837 = vmatmul.mubr.msk.bf16.gmra.mrb[76].mxu1 %vm5231_vm9, %v5773_v18 }
 0x16e   : > { %1602 = vmatprep.mubr.bf16.mxu1 %v5764_v45 }
 0x170   : > { %4651 = vmatpush3.bf16.msra.mxu0 %v4991_v33 }
 0x171   : > { %4652 = vmatprep.subr.bf16.mxu0 %v4992_v31 }
 0x173   : > { %3913 = vmatmul.mubr.msk.bf16.gmra.mrb[44].mxu0 %vm5231_vm9, %v5401_v15 }
 0x174   : > { %2004 = vmatprep.mubr.bf16.mxu0 %v5437_v55  ;;  %4653 = vmatpush3.bf16.msra.mxu0 %v4992_v31 }
 0x175   : > { %4654 = vmatprep.subr.bf16.mxu0 %v4993_v22  ;;  %3841 = vmatmul.mubr.msk.bf16.gmra.mrb[80].mxu1 %vm5231_vm9, %v5777_v26 }
 0x176   : > { %1610 = vmatprep.mubr.bf16.mxu1 %v5781_v59 }
 0x178   : > { %4655 = vmatpush3.bf16.msra.mxu0 %v4993_v22 }
 0x179   : > { %4688 = vmatprep.subr.bf16.mxu0 %v4994_v56 }
 0x17b   : > { %3917 = vmatmul.mubr.msk.bf16.gmra.mrb[48].mxu0 %vm5231_vm9, %v5471_v10 }
 0x17c   : > { %2012 = vmatprep.mubr.bf16.mxu0 %v5507_v62 }
 0x17d   : > { %3845 = vmatmul.mubr.msk.bf16.gmra.mrb[84].mxu1 %vm5231_vm9, %v5793_v16 }
 0x17e   : > { %1618 = vmatprep.mubr.bf16.mxu1 %v5795_v6 }
 0x183   : > { %3921 = vmatmul.mubr.msk.bf16.gmra.mrb[52].mxu0 %vm5231_vm9, %v5567_v13 }
 0x184   : > { %2020 = vmatprep.mubr.bf16.mxu0 %v5588_v51 }
 0x185   : > { %3849 = vmatmul.mubr.msk.bf16.gmra.mrb[88].mxu1 %vm5231_vm9, %v5802_v57 }
 0x186   : > { %1626 = vmatprep.mubr.bf16.mxu1 %v5799_v60 }
 0x18b   : > { %3925 = vmatmul.mubr.msk.bf16.gmra.mrb[56].mxu0 %vm5231_vm9, %v5623_v28 }
 0x18c   : > { %2028 = vmatprep.mubr.bf16.mxu0 %v5644_v41 }
 0x18d   : > { %3853 = vmatmul.mubr.msk.bf16.gmra.mrb[92].mxu1 %vm5231_vm9, %v5809_v32 }
 0x18e   : > { %2536 = vmatprep.mubr.bf16.mxu1 %v5278_v58  ;;  %v4995_v58 = vld [vmem:[%s6608_s4 + $0x208] sm:$0xff]  }
 0x193   : > { %3929 = vmatmul.mubr.msk.bf16.gmra.mrb[60].mxu0 %vm5231_vm9, %v5674_v5 }
 0x194   : > { %2036 = vmatprep.mubr.bf16.mxu0 %v5681_v52 }
 0x195   : > { %4010 = vmatmul.mubr.msk.bf16.vlgmr.msra.gmra.mrb[96].mxu1 %vm5231_vm9, %v5310_v11  ;;  %v4996_v11 = vld [vmem:[%s6608_s4 + $0x210] sm:$0xff]  }
 0x196   : > { %2544 = vmatprep.mubr.bf16.mxu1 %v5331_v20 }
 0x19b   : > { %3933 = vmatmul.mubr.msk.bf16.gmra.mrb[64].mxu0 %vm5231_vm9, %v5709_v48 }
 0x19c   : > { %2044 = vmatprep.mubr.bf16.mxu0 %v5700_v24 }
 0x19d   : > { %4014 = vmatmul.mubr.msk.bf16.gmra.mrb[100].mxu1 %vm5231_vm9, %v5401_v15 }
 0x19e   : > { %2552 = vmatprep.mubr.bf16.mxu1 %v5437_v55 }
 0x1a3   : > { %3937 = vmatmul.mubr.msk.bf16.gmra.mrb[68].mxu0 %vm5231_vm9, %v5715_v40 }
 0x1a4   : > { %2052 = vmatprep.mubr.bf16.mxu0 %v5723_v8 }
 0x1a5   : > { %4018 = vmatmul.mubr.msk.bf16.gmra.mrb[104].mxu1 %vm5231_vm9, %v5471_v10 }
 0x1a6   : > { %2560 = vmatprep.mubr.bf16.mxu1 %v5507_v62 }
 0x1ab   : > { %3941 = vmatmul.mubr.msk.bf16.gmra.mrb[72].mxu0 %vm5231_vm9, %v5735_v50 }
 0x1ac   : > { %2060 = vmatprep.mubr.bf16.mxu0 %v5739_v36 }
 0x1ad   : > { %4022 = vmatmul.mubr.msk.bf16.gmra.mrb[108].mxu1 %vm5231_vm9, %v5567_v13  ;;  %v4998_v13 = vld [vmem:[%s6608_s4 + $0x220] sm:$0xff]  }
 0x1ae   : > { %2568 = vmatprep.mubr.bf16.mxu1 %v5588_v51 }
 0x1b3   : > { %3945 = vmatmul.mubr.msk.bf16.gmra.mrb[76].mxu0 %vm5231_vm9, %v5755_v44 }
 0x1b4   : > { %2068 = vmatprep.mubr.bf16.mxu0 %v5748_v47 }
 0x1b5   : > { %4026 = vmatmul.mubr.msk.bf16.gmra.mrb[112].mxu1 %vm5231_vm9, %v5623_v28  ;;  %v4999_v28 = vld [vmem:[%s6608_s4 + $0x228] sm:$0xff]  }
 0x1b6   : > { %2576 = vmatprep.mubr.bf16.mxu1 %v5644_v41 }
 0x1bb   : > { %3949 = vmatmul.mubr.msk.bf16.gmra.mrb[80].mxu0 %vm5231_vm9, %v5773_v18 }
 0x1bc   : > { %2076 = vmatprep.mubr.bf16.mxu0 %v5764_v45 }
 0x1bd   : > { %4030 = vmatmul.mubr.msk.bf16.gmra.mrb[116].mxu1 %vm5231_vm9, %v5674_v5 }
 0x1be   : > { %2584 = vmatprep.mubr.bf16.mxu1 %v5681_v52 }
 0x1c3   : > { %3953 = vmatmul.mubr.msk.bf16.gmra.mrb[84].mxu0 %vm5231_vm9, %v5777_v26 }
 0x1c4   : > { %2084 = vmatprep.mubr.bf16.mxu0 %v5781_v59 }
 0x1c5   : > { %4034 = vmatmul.mubr.msk.bf16.gmra.mrb[120].mxu1 %vm5231_vm9, %v5709_v48  ;;  %v5000_v48 = vld [vmem:[%s6608_s4 + $0x230] sm:$0xff]  }
 0x1c6   : > { %2592 = vmatprep.mubr.bf16.mxu1 %v5700_v24 }
 0x1cb   : > { %3957 = vmatmul.mubr.msk.bf16.gmra.mrb[88].mxu0 %vm5231_vm9, %v5793_v16 }
 0x1cc   : > { %2092 = vmatprep.mubr.bf16.mxu0 %v5795_v6 }
 0x1cd   : > { %4038 = vmatmul.mubr.msk.bf16.gmra.mrb[124].mxu1 %vm5231_vm9, %v5715_v40 }
 0x1ce   : > { %2600 = vmatprep.mubr.bf16.mxu1 %v5723_v8  ;;  %v5001_v8 = vld [vmem:[%s6608_s4 + $0x238] sm:$0xff]  }
 0x1d3   : > { %3961 = vmatmul.mubr.msk.bf16.gmra.mrb[92].mxu0 %vm5231_vm9, %v5802_v57 }
 0x1d4   : > { %4656 = vmatprep.mubr.bf16.mxu0 %v5011_v39 }
 0x1d5   : > { %4042 = vmatmul.mubr.msk.bf16.gmra.mrb[128].mxu1 %vm5231_vm9, %v5735_v50 }
 0x1d6   : > { %2608 = vmatprep.mubr.bf16.mxu1 %v5739_v36 }
 0x1db   : > { %4657 = vmatmul.mubr.msk.bf16.vlgmr.msra.gmra.mrb[0].mxu0 %vm5260_vm13, %v5267_v53  ;;  %v4997_v53 = vld [vmem:[%s6608_s4 + $0x218] sm:$0xff]  }
 0x1dc   : > { %4689 = vmatpush3.bf16.msra.mxu0 %v4994_v56  ;;  %4660 = vmatprep.mubr.msk.bf16.mxu0 %vm5260_vm13, %v5293_v2 }
 0x1dd   : > { %4690 = vmatprep.subr.bf16.mxu0 %v4995_v58  ;;  %4046 = vmatmul.mubr.msk.bf16.gmra.mrb[132].mxu1 %vm5231_vm9, %v5755_v44 }
 0x1de   : > { %2616 = vmatprep.mubr.bf16.mxu1 %v5748_v47 }
 0x1e0   : > { %4691 = vmatpush3.bf16.msra.mxu0 %v4995_v58 }
 0x1e1   : > { %4692 = vmatprep.subr.bf16.mxu0 %v4996_v11 }
 0x1e3   : > { %4661 = vmatmul.mubr.msk.bf16.gmra.mrb[4].mxu0 %vm5260_vm13, %v5327_v19 }
 0x1e4   : > { %v4152_v20 = vpop.f32.mrb[32].mxu1  ;;  %4664 = vmatprep.mubr.msk.bf16.mxu0 %vm5260_vm13, %v5364_v49  ;;  %4693 = vmatpush3.bf16.msra.mxu0 %v4996_v11 }
 0x1e5   : > { %v4153_v15 = vpop.f32.mrb[33].mxu1  ;;  %4694 = vmatprep.subr.bf16.mxu0 %v4997_v53  ;;  %4050 = vmatmul.mubr.msk.bf16.gmra.mrb[136].mxu1 %vm5231_vm9, %v5773_v18  ;;  %v6661_v18 = vld [vmem:[#allocation4_spill] sm:$0xff] }
 0x1e6   : > { %v5995_v55 = vadd.f32 %v4153_v15, %v4152_v20  ;;  %v4155_v10 = vpop.f32.mrb[34].mxu1  ;;  %2624 = vmatprep.mubr.bf16.mxu1 %v5764_v45 }
 0x1e7   : > { %v4156_v62 = vpop.f32.mrb[35].mxu1 }
 0x1e8   : > { %v6003_v51 = vadd.f32 %v4156_v62, %v4155_v10  ;;  %4695 = vmatpush3.bf16.msra.mxu0 %v4997_v53 }
 0x1e9   : > { %4696 = vmatprep.subr.bf16.mxu0 %v4998_v13 }
 0x1eb   : > { %4665 = vmatmul.mubr.msk.bf16.gmra.mrb[8].mxu0 %vm5260_vm13, %v5433_v54 }
 0x1ec   : > { %v4158_v41 = vpop.f32.mrb[36].mxu1  ;;  %4668 = vmatprep.mubr.msk.bf16.mxu0 %vm5260_vm13, %v5453_v4  ;;  %4697 = vmatpush3.bf16.msra.mxu0 %v4998_v13 }
 0x1ed   : > { %v4159_v5 = vpop.f32.mrb[37].mxu1  ;;  %4698 = vmatprep.subr.bf16.mxu0 %v4999_v28  ;;  %4054 = vmatmul.mubr.msk.bf16.gmra.mrb[140].mxu1 %vm5231_vm9, %v5777_v26 }
 0x1ee   : > { %v6015_v52 = vadd.f32 %v4159_v5, %v4158_v41  ;;  %v4161_v1 = vpop.f32.mrb[38].mxu1  ;;  %2632 = vmatprep.mubr.bf16.mxu1 %v5781_v59 }
 0x1ef   : > { %v4162_v24 = vpop.f32.mrb[39].mxu1 }
 0x1f0   : > { %v6023_v40 = vadd.f32 %v4162_v24, %v4161_v1  ;;  %4699 = vmatpush3.bf16.msra.mxu0 %v4999_v28 }
 0x1f1   : > { %4700 = vmatprep.subr.bf16.mxu0 %v5000_v48 }
 0x1f3   : > { %4669 = vmatmul.mubr.msk.bf16.gmra.mrb[12].mxu0 %vm5260_vm13, %v5482_v34 }
 0x1f4   : > { %4672 = vmatprep.mubr.msk.bf16.mxu0 %vm5260_vm13, %v5516_v9  ;;  %4701 = vmatpush3.bf16.msra.mxu0 %v5000_v48 }
 0x1f5   : > { %4702 = vmatprep.subr.bf16.mxu0 %v5001_v8  ;;  %4058 = vmatmul.mubr.msk.bf16.gmra.mrb[144].mxu1 %vm5231_vm9, %v5793_v16  ;;  %v6663_v16 = vld [vmem:[#allocation6_spill] sm:$0xff] }
 0x1f6   : > { %2640 = vmatprep.mubr.bf16.mxu1 %v5795_v6 }
 0x1f7   : > { %v4164_v50 = vpop.f32.mrb[40].mxu1 }
 0x1f8   : > { %v4165_v36 = vpop.f32.mrb[41].mxu1  ;;  %4703 = vmatpush3.bf16.msra.mxu0 %v5001_v8 }
 0x1f9   : > { %v6039_v47 = vadd.f32 %v4165_v36, %v4164_v50  ;;  %v4167_v44 = vpop.f32.mrb[42].mxu1 }
 0x1fa   : > { %v4168_v45 = vpop.f32.mrb[43].mxu1 }
 0x1fb   : > { %v6041_v30 = vadd.f32 %v4168_v45, %v4167_v44  ;;  %4673 = vmatmul.mubr.msk.bf16.gmra.mrb[16].mxu0 %vm5260_vm13, %v6660_v37 }
 0x1fc   : > { %4676 = vmatprep.mubr.msk.bf16.mxu0 %vm5260_vm13, %v6661_v18 }
 0x1fd   : > { %4062 = vmatmul.mubr.msk.bf16.gmra.mrb[148].mxu1 %vm5231_vm9, %v5802_v57 }
 0x1fe   : > { %2648 = vmatprep.mubr.bf16.mxu1 %v5799_v60 }
 0x1ff   : > { %v4170_v14 = vpop.f32.mrb[44].mxu1 }
 0x200   : > { %v4171_v26 = vpop.f32.mrb[45].mxu1 }
 0x201   : > { %v6053_v59 = vadd.f32 %v4171_v26, %v4170_v14  ;;  %v4173_v7 = vpop.f32.mrb[46].mxu1 }
 0x202   : > { %v4174_v3 = vpop.f32.mrb[47].mxu1 }
 0x203   : > { %v6055_v35 = vadd.f32 %v4174_v3, %v4173_v7  ;;  %4677 = vmatmul.mubr.msk.bf16.gmra.mrb[20].mxu0 %vm5260_vm13, %v6662_v38 }
 0x204   : > { %4680 = vmatprep.mubr.msk.bf16.mxu0 %vm5260_vm13, %v6663_v16 }
 0x205   : > { %4066 = vmatmul.mubr.msk.bf16.gmra.mrb[152].mxu1 %vm5231_vm9, %v5809_v32 }
 0x206   : > { %2656 = vmatprep.mubr.bf16.mxu1 %v5011_v39 }
 0x208   : > { %v4176_v6 = vpop.f32.mrb[48].mxu1 }
 0x209   : > { %v4177_v25 = vpop.f32.mrb[49].mxu1 }
 0x20a   : > { %v6067_v60 = vadd.f32 %v4177_v25, %v4176_v6  ;;  %v4179_v57 = vpop.f32.mrb[50].mxu1 }
 0x20b   : > { %4681 = vmatmul.mubr.msk.bf16.gmra.mrb[24].mxu0 %vm5260_vm13, %v6664_v23  ;;  %v4180_v61 = vpop.f32.mrb[51].mxu1 }
 0x20c   : > { %4684 = vmatprep.mubr.msk.bf16.mxu0 %vm5260_vm13, %v5691_v17  ;;  %v6075_v12 = vadd.f32 %v4180_v61, %v4179_v57 }
 0x20d   : > { %2657 = vmatmul.mubr.bf16.gmra.mrb[156].mxu1 %v5011_v39 }
 0x210   : > { %v4182_v29 = vpop.f32.mrb[52].mxu1 }
 0x211   : > { %v4183_v32 = vpop.f32.mrb[53].mxu1 }
 0x212   : > { %v6081_v63 = vadd.f32 %v4183_v32, %v4182_v29  ;;  %v4185_v0 = vpop.f32.mrb[54].mxu1 }
 0x213   : > { %4685 = vmatmul.mubr.msk.bf16.gmra.mrb[28].mxu0 %vm5260_vm13, %v5717_v43  ;;  %v4186_v42 = vpop.f32.mrb[55].mxu1 }
 0x214   : > { %4704 = vmatprep.mubr.msk.bf16.mxu0 %vm5260_vm13, %v5293_v2  ;;  %v6086_v21 = vadd.f32 %v4186_v42, %v4185_v0 }
 0x218   : > { %v4188_v33 = vpop.f32.mrb[56].mxu1 }
 0x219   : > { %v4189_v31 = vpop.f32.mrb[57].mxu1 }
 0x21a   : > { %v6091_v22 = vadd.f32 %v4189_v31, %v4188_v33  ;;  %v4191_v56 = vpop.f32.mrb[58].mxu1 }
 0x21b   : > { %4705 = vmatmul.mubr.msk.bf16.vlgmr.msra.gmra.mrb[0].mxu0 %vm5260_vm13, %v5327_v19  ;;  %v4192_v58 = vpop.f32.mrb[59].mxu1 }
 0x21c   : > { %4708 = vmatprep.mubr.msk.bf16.mxu0 %vm5260_vm13, %v5364_v49  ;;  %v6096_v11 = vadd.f32 %v4192_v58, %v4191_v56 }
 0x220   : > { %v4194_v2 = vpop.f32.mrb[60].mxu1 }
 0x221   : > { %v4195_v53 = vpop.f32.mrb[61].mxu1 }
 0x222   : > { %v6101_v20 = vadd.f32 %v4195_v53, %v4194_v2  ;;  %v4197_v15 = vpop.f32.mrb[62].mxu1 }
 0x223   : > { %4709 = vmatmul.mubr.msk.bf16.gmra.mrb[4].mxu0 %vm5260_vm13, %v5433_v54  ;;  %v4198_v19 = vpop.f32.mrb[63].mxu1 }
 0x224   : > { %4712 = vmatprep.mubr.msk.bf16.mxu0 %vm5260_vm13, %v5453_v4  ;;  %v6106_v10 = vadd.f32 %v4198_v19, %v4197_v15 }
 0x228   : > { %v4200_v49 = vpop.f32.mrb[64].mxu1 }
 0x229   : > { %v4201_v62 = vpop.f32.mrb[65].mxu1 }
 0x22a   : > { %v6111_v13 = vadd.f32 %v4201_v62, %v4200_v49  ;;  %v4203_v28 = vpop.f32.mrb[66].mxu1 }
 0x22b   : > { %4713 = vmatmul.mubr.msk.bf16.gmra.mrb[8].mxu0 %vm5260_vm13, %v5482_v34  ;;  %v4204_v54 = vpop.f32.mrb[67].mxu1 }
 0x22c   : > { %4716 = vmatprep.mubr.msk.bf16.mxu0 %vm5260_vm13, %v5516_v9  ;;  %v6116_v41 = vadd.f32 %v4204_v54, %v4203_v28 }
 0x22e   : > { %v4288_v4 = vpop.f32.mrb[32].mxu0 }
 0x22f   : > { %v4289_v5 = vpop.f32.mrb[33].mxu0 }
 0x230   : > { %v4290_v1 = vadd.f32 %v4289_v5, %v4288_v4  ;;  %v4291_v24 = vpop.f32.mrb[34].mxu0  ;;  %v4206_v8 = vpop.f32.mrb[68].mxu1 }
 0x231   : > { %v4292_v48 = vpop.f32.mrb[35].mxu0  ;;  %v4207_v36 = vpop.f32.mrb[69].mxu1 }
 0x232   : > { %v6119_v50 = vadd.f32 %v4290_v1, %v5995_v55  ;;  %v4293_v34 = vadd.f32 %v4292_v48, %v4291_v24  ;;  %v6124_v44 = vadd.f32 %v4207_v36, %v4206_v8  ;;  %v4209_v9 = vpop.f32.mrb[70].mxu1 }
 0x233   : > { %4717 = vmatmul.mubr.msk.bf16.gmra.mrb[12].mxu0 %vm5260_vm13, %v6660_v37  ;;  %v4210_v14 = vpop.f32.mrb[71].mxu1 }
 0x234   : > { %v6127_v45 = vadd.f32 %v4293_v34, %v6003_v51  ;;  %4720 = vmatprep.mubr.msk.bf16.mxu0 %vm5260_vm13, %v6661_v18  ;;  %v6132_v26 = vadd.f32 %v4210_v14, %v4209_v9 }
 0x236   : > { %v4294_v55 = vpop.f32.mrb[36].mxu0 }
 0x237   : > { %v4295_v7 = vpop.f32.mrb[37].mxu0 }
 0x238   : > { %v4296_v3 = vadd.f32 %v4295_v7, %v4294_v55  ;;  %v4297_v6 = vpop.f32.mrb[38].mxu0  ;;  %v4212_v57 = vpop.f32.mrb[72].mxu1 }
 0x239   : > { %v4298_v25 = vpop.f32.mrb[39].mxu0  ;;  %v4213_v29 = vpop.f32.mrb[73].mxu1 }
 0x23a   : > { %v6135_v37 = vadd.f32 %v4296_v3, %v6015_v52  ;;  %v4299_v61 = vadd.f32 %v4298_v25, %v4297_v6  ;;  %v6140_v51 = vadd.f32 %v4213_v29, %v4212_v57  ;;  %v4215_v18 = vpop.f32.mrb[74].mxu1 }
 0x23b   : > { %4721 = vmatmul.mubr.msk.bf16.gmra.mrb[16].mxu0 %vm5260_vm13, %v6662_v38  ;;  %v4216_v0 = vpop.f32.mrb[75].mxu1 }
 0x23c   : > { %v6143_v32 = vadd.f32 %v4299_v61, %v6023_v40  ;;  %4724 = vmatprep.mubr.msk.bf16.mxu0 %vm5260_vm13, %v6663_v16  ;;  %v6148_v42 = vadd.f32 %v4216_v0, %v4215_v18 }
 0x23e   : > { %v4300_v52 = vpop.f32.mrb[40].mxu0 }
 0x23f   : > { %v4301_v33 = vpop.f32.mrb[41].mxu0 }
 0x240   : > { %v4302_v31 = vadd.f32 %v4301_v33, %v4300_v52  ;;  %v4303_v56 = vpop.f32.mrb[42].mxu0  ;;  %v4218_v2 = vpop.f32.mrb[76].mxu1 }
 0x241   : > { %v4304_v58 = vpop.f32.mrb[43].mxu0  ;;  %v4219_v15 = vpop.f32.mrb[77].mxu1 }
 0x242   : > { %v6151_v38 = vadd.f32 %v4302_v31, %v6039_v47  ;;  %v4305_v53 = vadd.f32 %v4304_v58, %v4303_v56  ;;  %v6156_v40 = vadd.f32 %v4219_v15, %v4218_v2  ;;  %v4221_v16 = vpop.f32.mrb[78].mxu1 }
 0x243   : > { %4725 = vmatmul.mubr.msk.bf16.gmra.mrb[20].mxu0 %vm5260_vm13, %v6664_v23  ;;  %v4222_v49 = vpop.f32.mrb[79].mxu1 }
 0x244   : > { %v6159_v19 = vadd.f32 %v4305_v53, %v6041_v30  ;;  %4728 = vmatprep.mubr.msk.bf16.mxu0 %vm5260_vm13, %v5691_v17  ;;  %v6164_v62 = vadd.f32 %v4222_v49, %v4221_v16 }
 0x246   : > { %v4306_v47 = vpop.f32.mrb[44].mxu0 }
 0x247   : > { %v4307_v28 = vpop.f32.mrb[45].mxu0 }
 0x248   : > { %v4308_v54 = vadd.f32 %v4307_v28, %v4306_v47  ;;  %v4309_v4 = vpop.f32.mrb[46].mxu0  ;;  %v4224_v1 = vpop.f32.mrb[80].mxu1 }
 0x249   : > { %v4310_v5 = vpop.f32.mrb[47].mxu0  ;;  %v4225_v48 = vpop.f32.mrb[81].mxu1 }
 0x24a   : > { %v6167_v23 = vadd.f32 %v4308_v54, %v6053_v59  ;;  %v4311_v24 = vadd.f32 %v4310_v5, %v4309_v4  ;;  %v6172_v30 = vadd.f32 %v4225_v48, %v4224_v1  ;;  %v4227_v17 = vpop.f32.mrb[82].mxu1 }
 0x24b   : > { %4729 = vmatmul.mubr.msk.bf16.gmra.mrb[24].mxu0 %vm5260_vm13, %v5717_v43  ;;  %v4228_v34 = vpop.f32.mrb[83].mxu1 }
 0x24c   : > { %v6175_v8 = vadd.f32 %v4311_v24, %v6055_v35  ;;  %4732 = vmatprep.mubr.msk.bf16.mxu0 %vm5260_vm13, %v5719_v27  ;;  %v6180_v36 = vadd.f32 %v4228_v34, %v4227_v17 }
 0x24e   : > { %v4312_v59 = vpop.f32.mrb[48].mxu0 }
 0x24f   : > { %v4313_v9 = vpop.f32.mrb[49].mxu0 }
 0x250   : > { %v4314_v14 = vadd.f32 %v4313_v9, %v4312_v59  ;;  %v4315_v55 = vpop.f32.mrb[50].mxu0  ;;  %v4230_v3 = vpop.f32.mrb[84].mxu1 }
 0x251   : > { %v4316_v7 = vpop.f32.mrb[51].mxu0  ;;  %v4231_v25 = vpop.f32.mrb[85].mxu1 }
 0x252   : > { %v6183_v43 = vadd.f32 %v4314_v14, %v6067_v60  ;;  %v4317_v6 = vadd.f32 %v4316_v7, %v4315_v55  ;;  %v6186_v35 = vadd.f32 %v4231_v25, %v4230_v3  ;;  %v4233_v46 = vpop.f32.mrb[86].mxu1 }
 0x253   : > { %4733 = vmatmul.mubr.bf16.gmra.mrb[28].mxu0 %v5011_v39  ;;  %v4234_v57 = vpop.f32.mrb[87].mxu1 }
 0x254   : > { %v6189_v27 = vadd.f32 %v4317_v6, %v6075_v12  ;;  %v6191_v61 = vadd.f32 %v4234_v57, %v4233_v46 }
 0x256   : > { %v4318_v29 = vpop.f32.mrb[52].mxu0 }
 0x257   : > { %v4319_v18 = vpop.f32.mrb[53].mxu0 }
 0x258   : > { %v4320_v0 = vadd.f32 %v4319_v18, %v4318_v29  ;;  %v4321_v52 = vpop.f32.mrb[54].mxu0  ;;  %v4236_v60 = vpop.f32.mrb[88].mxu1 }
 0x259   : > { %v4322_v33 = vpop.f32.mrb[55].mxu0  ;;  %v4237_v39 = vpop.f32.mrb[89].mxu1 }
 0x25a   : > { %v6194_v31 = vadd.f32 %v4320_v0, %v6081_v63  ;;  %v4323_v56 = vadd.f32 %v4322_v33, %v4321_v52  ;;  %v6196_v58 = vadd.f32 %v4237_v39, %v4236_v60  ;;  %v4239_v2 = vpop.f32.mrb[90].mxu1 }
 0x25b   : > { %v4240_v53 = vpop.f32.mrb[91].mxu1 }
 0x25c   : > { %v6199_v12 = vadd.f32 %v4323_v56, %v6086_v21  ;;  %v6201_v15 = vadd.f32 %v4240_v53, %v4239_v2 }
 0x25e   : > { %v4324_v16 = vpop.f32.mrb[56].mxu0 }
 0x25f   : > { %v4325_v49 = vpop.f32.mrb[57].mxu0 }
 0x260   : > { %v4326_v47 = vadd.f32 %v4325_v49, %v4324_v16  ;;  %v4327_v28 = vpop.f32.mrb[58].mxu0  ;;  %v4242_v4 = vpop.f32.mrb[92].mxu1 }
 0x261   : > { %v4328_v54 = vpop.f32.mrb[59].mxu0  ;;  %v4243_v1 = vpop.f32.mrb[93].mxu1 }
 0x262   : > { %v6204_v63 = vadd.f32 %v4326_v47, %v6091_v22  ;;  %v4329_v5 = vadd.f32 %v4328_v54, %v4327_v28  ;;  %v6206_v24 = vadd.f32 %v4243_v1, %v4242_v4  ;;  %v4245_v48 = vpop.f32.mrb[94].mxu1 }
 0x263   : > { %v4246_v17 = vpop.f32.mrb[95].mxu1 }
 0x264   : > { %v6209_v21 = vadd.f32 %v4329_v5, %v6096_v11  ;;  %v6211_v34 = vadd.f32 %v4246_v17, %v4245_v48 }
 0x266   : > { %v4330_v59 = vpop.f32.mrb[60].mxu0 }
 0x267   : > { %v4331_v9 = vpop.f32.mrb[61].mxu0 }
 0x268   : > { %v4332_v14 = vadd.f32 %v4331_v9, %v4330_v59  ;;  %v4333_v55 = vpop.f32.mrb[62].mxu0  ;;  %v4424_v3 = vpop.f32.mrb[96].mxu1 }
 0x269   : > { %v4334_v7 = vpop.f32.mrb[63].mxu0  ;;  %v4425_v25 = vpop.f32.mrb[97].mxu1 }
 0x26a   : > { %v6214_v22 = vadd.f32 %v4332_v14, %v6101_v20  ;;  %v4335_v6 = vadd.f32 %v4334_v7, %v4333_v55  ;;  %v4426_v46 = vadd.f32 %v4425_v25, %v4424_v3  ;;  %v4427_v57 = vpop.f32.mrb[98].mxu1 }
 0x26b   : > { %v4428_v11 = vpop.f32.mrb[99].mxu1 }
 0x26c   : > { %v6217_v29 = vadd.f32 %v4335_v6, %v6106_v10  ;;  %v4429_v18 = vadd.f32 %v4428_v11, %v4427_v57  ;;  %v6220_v0 = vadd.f32 %v6119_v50, %v4426_v46 }
 0x26e   : > { %v4336_v52 = vpop.f32.mrb[64].mxu0  ;;  %v6223_v60 = vadd.f32 %v6127_v45, %v4429_v18 }
 0x26f   : > { %v4337_v33 = vpop.f32.mrb[65].mxu0 }
 0x270   : > { %v4338_v56 = vadd.f32 %v4337_v33, %v4336_v52  ;;  %v4339_v20 = vpop.f32.mrb[66].mxu0  ;;  %v4430_v2 = vpop.f32.mrb[100].mxu1 }
 0x271   : > { %v4340_v39 = vpop.f32.mrb[67].mxu0  ;;  %v4431_v10 = vpop.f32.mrb[101].mxu1 }
 0x272   : > { %v6226_v53 = vadd.f32 %v4338_v56, %v6111_v13  ;;  %v4341_v16 = vadd.f32 %v4340_v39, %v4339_v20  ;;  %v4432_v49 = vadd.f32 %v4431_v10, %v4430_v2  ;;  %v4433_v47 = vpop.f32.mrb[102].mxu1 }
 0x273   : > { %v4434_v50 = vpop.f32.mrb[103].mxu1 }
 0x274   : > { %v6229_v28 = vadd.f32 %v4341_v16, %v6116_v41  ;;  %v4435_v54 = vadd.f32 %v4434_v50, %v4433_v47  ;;  %v6232_v4 = vadd.f32 %v6135_v37, %v4432_v49 }
 0x276   : > { %v4342_v45 = vpop.f32.mrb[68].mxu0  ;;  %v6235_v1 = vadd.f32 %v6143_v32, %v4435_v54 }
 0x277   : > { %v4343_v5 = vpop.f32.mrb[69].mxu0 }
 0x278   : > { %v4344_v48 = vadd.f32 %v4343_v5, %v4342_v45  ;;  %v4345_v13 = vpop.f32.mrb[70].mxu0  ;;  %v4436_v59 = vpop.f32.mrb[104].mxu1 }
 0x279   : > { %v4346_v17 = vpop.f32.mrb[71].mxu0  ;;  %v4437_v41 = vpop.f32.mrb[105].mxu1 }
 0x27a   : > { %v6238_v9 = vadd.f32 %v4344_v48, %v6124_v44  ;;  %v4347_v14 = vadd.f32 %v4346_v17, %v4345_v13  ;;  %v4438_v55 = vadd.f32 %v4437_v41, %v4436_v59  ;;  %v4439_v7 = vpop.f32.mrb[106].mxu1 }
 0x27b   : > { %v4440_v37 = vpop.f32.mrb[107].mxu1 }
 0x27c   : > { %v6241_v3 = vadd.f32 %v4347_v14, %v6132_v26  ;;  %v4441_v6 = vadd.f32 %v4440_v37, %v4439_v7  ;;  %v6244_v25 = vadd.f32 %v6151_v38, %v4438_v55 }
 0x27e   : > { %v4348_v32 = vpop.f32.mrb[72].mxu0  ;;  %v6247_v57 = vadd.f32 %v6159_v19, %v4441_v6 }
 0x27f   : > { %v4349_v46 = vpop.f32.mrb[73].mxu0 }
 0x280   : > { %v4350_v11 = vadd.f32 %v4349_v46, %v4348_v32  ;;  %v4351_v44 = vpop.f32.mrb[74].mxu0  ;;  %v4442_v52 = vpop.f32.mrb[108].mxu1 }
 0x281   : > { %v4352_v18 = vpop.f32.mrb[75].mxu0  ;;  %v4443_v26 = vpop.f32.mrb[109].mxu1 }
 0x282   : > { %v6250_v33 = vadd.f32 %v4350_v11, %v6140_v51  ;;  %v4353_v56 = vadd.f32 %v4352_v18, %v4351_v44  ;;  %v4444_v20 = vadd.f32 %v4443_v26, %v4442_v52  ;;  %v4445_v39 = vpop.f32.mrb[110].mxu1 }
 0x283   : > { %v4446_v38 = vpop.f32.mrb[111].mxu1 }
 0x284   : > { %v6253_v2 = vadd.f32 %v4353_v56, %v6148_v42  ;;  %v4447_v16 = vadd.f32 %v4446_v38, %v4445_v39  ;;  %v6256_v10 = vadd.f32 %v6167_v23, %v4444_v20 }
 0x286   : > { %v4354_v19 = vpop.f32.mrb[76].mxu0  ;;  %v6259_v47 = vadd.f32 %v6175_v8, %v4447_v16 }
 0x287   : > { %v4355_v49 = vpop.f32.mrb[77].mxu0 }
 0x288   : > { %v4356_v50 = vadd.f32 %v4355_v49, %v4354_v19  ;;  %v4357_v51 = vpop.f32.mrb[78].mxu0  ;;  %v4448_v45 = vpop.f32.mrb[112].mxu1 }
 0x289   : > { %v4358_v54 = vpop.f32.mrb[79].mxu0  ;;  %v4449_v42 = vpop.f32.mrb[113].mxu1 }
 0x28a   : > { %v6262_v5 = vadd.f32 %v4356_v50, %v6156_v40  ;;  %v4359_v48 = vadd.f32 %v4358_v54, %v4357_v51  ;;  %v4450_v13 = vadd.f32 %v4449_v42, %v4448_v45  ;;  %v4451_v17 = vpop.f32.mrb[114].mxu1 }
 0x28b   : > { %v4452_v23 = vpop.f32.mrb[115].mxu1 }
 0x28c   : > { %v6265_v59 = vadd.f32 %v4359_v48, %v6164_v62  ;;  %v4453_v14 = vadd.f32 %v4452_v23, %v4451_v17  ;;  %v6268_v41 = vadd.f32 %v6183_v43, %v4450_v13 }
 0x28e   : > { %v4360_v8 = vpop.f32.mrb[80].mxu0  ;;  %v6271_v7 = vadd.f32 %v6189_v27, %v4453_v14 }
 0x28f   : > { %v4361_v55 = vpop.f32.mrb[81].mxu0 }
 0x290   : > { %v4362_v37 = vadd.f32 %v4361_v55, %v4360_v8  ;;  %v4363_v40 = vpop.f32.mrb[82].mxu0  ;;  %v4454_v32 = vpop.f32.mrb[116].mxu1 }
 0x291   : > { %v4364_v6 = vpop.f32.mrb[83].mxu0  ;;  %v4455_v62 = vpop.f32.mrb[117].mxu1 }
 0x292   : > { %v6274_v46 = vadd.f32 %v4362_v37, %v6172_v30  ;;  %v4365_v11 = vadd.f32 %v4364_v6, %v4363_v40  ;;  %v4456_v44 = vadd.f32 %v4455_v62, %v4454_v32  ;;  %v4457_v18 = vpop.f32.mrb[118].mxu1 }
 0x293   : > { %v4458_v43 = vpop.f32.mrb[119].mxu1 }
 0x294   : > { %v6277_v52 = vadd.f32 %v4365_v11, %v6180_v36  ;;  %v4459_v56 = vadd.f32 %v4458_v43, %v4457_v18  ;;  %v6280_v26 = vadd.f32 %v6194_v31, %v4456_v44 }
 0x296   : > { %v4366_v27 = vpop.f32.mrb[84].mxu0  ;;  %v6283_v39 = vadd.f32 %v6199_v12, %v4459_v56 }
 0x297   : > { %v4367_v20 = vpop.f32.mrb[85].mxu0 }
 0x298   : > { %v4368_v38 = vadd.f32 %v4367_v20, %v4366_v27  ;;  %v4369_v30 = vpop.f32.mrb[86].mxu0  ;;  %v4460_v19 = vpop.f32.mrb[120].mxu1 }
 0x299   : > { %v4370_v16 = vpop.f32.mrb[87].mxu0  ;;  %v4461_v36 = vpop.f32.mrb[121].mxu1 }
 0x29a   : > { %v6286_v49 = vadd.f32 %v4368_v38, %v6186_v35  ;;  %v4371_v50 = vadd.f32 %v4370_v16, %v4369_v30  ;;  %v4462_v51 = vadd.f32 %v4461_v36, %v4460_v19  ;;  %v4463_v54 = vpop.f32.mrb[122].mxu1 }
 0x29b   : > { %v4464_v31 = vpop.f32.mrb[123].mxu1 }
 0x29c   : > { %v6289_v45 = vadd.f32 %v4371_v50, %v6191_v61  ;;  %v4465_v48 = vadd.f32 %v4464_v31, %v4463_v54  ;;  %v6292_v42 = vadd.f32 %v6204_v63, %v4462_v51 }
 0x29e   : > { %v4372_v12 = vpop.f32.mrb[88].mxu0  ;;  %v6295_v17 = vadd.f32 %v6209_v21, %v4465_v48 }
 0x29f   : > { %v4373_v13 = vpop.f32.mrb[89].mxu0 }
 0x2a0   : > { %v4374_v23 = vadd.f32 %v4373_v13, %v4372_v12  ;;  %v4375_v35 = vpop.f32.mrb[90].mxu0  ;;  %v4466_v8 = vpop.f32.mrb[124].mxu1 }
 0x2a1   : > { %v4376_v14 = vpop.f32.mrb[91].mxu0  ;;  %v4467_v61 = vpop.f32.mrb[125].mxu1 }
 0x2a2   : > { %v6298_v55 = vadd.f32 %v4374_v23, %v6196_v58  ;;  %v4377_v37 = vadd.f32 %v4376_v14, %v4375_v35  ;;  %v4468_v40 = vadd.f32 %v4467_v61, %v4466_v8  ;;  %v4469_v6 = vpop.f32.mrb[126].mxu1 }
 0x2a3   : > { %v4470_v63 = vpop.f32.mrb[127].mxu1 }
 0x2a4   : > { %v6301_v32 = vadd.f32 %v4377_v37, %v6201_v15  ;;  %v4471_v11 = vadd.f32 %v4470_v63, %v4469_v6  ;;  %v6304_v62 = vadd.f32 %v6214_v22, %v4468_v40 }
 0x2a6   : > { %v4378_v21 = vpop.f32.mrb[92].mxu0  ;;  %v6307_v18 = vadd.f32 %v6217_v29, %v4471_v11 }
 0x2a7   : > { %v4379_v44 = vpop.f32.mrb[93].mxu0 }
 0x2a8   : > { %v4380_v43 = vadd.f32 %v4379_v44, %v4378_v21  ;;  %v4381_v58 = vpop.f32.mrb[94].mxu0  ;;  %v4472_v27 = vpop.f32.mrb[128].mxu1 }
 0x2a9   : > { %v4382_v56 = vpop.f32.mrb[95].mxu0  ;;  %v4473_v15 = vpop.f32.mrb[129].mxu1 }
 0x2aa   : > { %v6310_v20 = vadd.f32 %v4380_v43, %v6206_v24  ;;  %v4383_v38 = vadd.f32 %v4382_v56, %v4381_v58  ;;  %v4474_v30 = vadd.f32 %v4473_v15, %v4472_v27  ;;  %v4475_v16 = vpop.f32.mrb[130].mxu1 }
 0x2ab   : > { %v4476_v22 = vpop.f32.mrb[131].mxu1 }
 0x2ac   : > { %v4826_v19 = vadd.f32 %v4383_v38, %v6211_v34  ;;  %v4477_v50 = vadd.f32 %v4476_v22, %v4475_v16  ;;  %v6314_v36 = vadd.f32 %v6226_v53, %v4474_v30 }
 0x2ae   : > { %v6317_v29 = vadd.f32 %v6229_v28, %v4477_v50 }
 0x2b0   : > { %v4478_v51 = vpop.f32.mrb[132].mxu1 }
 0x2b1   : > { %v4479_v54 = vpop.f32.mrb[133].mxu1 }
 0x2b2   : > { %v4480_v31 = vadd.f32 %v4479_v54, %v4478_v51  ;;  %v4481_v48 = vpop.f32.mrb[134].mxu1 }
 0x2b3   : > { %v4482_v24 = vpop.f32.mrb[135].mxu1 }
 0x2b4   : > { %v4483_v12 = vadd.f32 %v4482_v24, %v4481_v48  ;;  %v6320_v13 = vadd.f32 %v6238_v9, %v4480_v31 }
 0x2b6   : > { %v6323_v23 = vadd.f32 %v6241_v3, %v4483_v12 }
 0x2b8   : > { %v4484_v34 = vpop.f32.mrb[136].mxu1 }
 0x2b9   : > { %v4485_v35 = vpop.f32.mrb[137].mxu1 }
 0x2ba   : > { %v4486_v14 = vadd.f32 %v4485_v35, %v4484_v34  ;;  %v4487_v53 = vpop.f32.mrb[138].mxu1 }
 0x2bb   : > { %v4488_v8 = vpop.f32.mrb[139].mxu1 }
 0x2bc   : > { %v4489_v37 = vadd.f32 %v4488_v8, %v4487_v53  ;;  %v6326_v28 = vadd.f32 %v6250_v33, %v4486_v14 }
 0x2be   : > { %v6329_v61 = vadd.f32 %v6253_v2, %v4489_v37 }
 0x2c0   : > { %v4490_v40 = vpop.f32.mrb[140].mxu1 }
 0x2c1   : > { %v4491_v6 = vpop.f32.mrb[141].mxu1 }
 0x2c2   : > { %v4492_v63 = vadd.f32 %v4491_v6, %v4490_v40  ;;  %v4493_v9 = vpop.f32.mrb[142].mxu1 }
 0x2c3   : > { %v4494_v11 = vpop.f32.mrb[143].mxu1 }
 0x2c4   : > { %v4495_v21 = vadd.f32 %v4494_v11, %v4493_v9  ;;  %v6332_v3 = vadd.f32 %v6262_v5, %v4492_v63  ;;  %v3760_v63 = vld [vmem:[%s5077_s12 + $0x8] sm:$0xff]   ;;  %v6362_v9 = vld [vmem:[%s5077_s12] sm:$0xff]   ;;  %v6370_v11 = vld [vmem:[%s5077_s12 + $0x18] sm:$0xff]  }
 0x2c6   : > { %v6335_v44 = vadd.f32 %v6265_v59, %v4495_v21  ;;  %v6373_v21 = vld [vmem:[%s5077_s12 + $0x10] sm:$0xff]  }
 0x2c8   : > { %v4496_v43 = vpop.f32.mrb[144].mxu1 }
 0x2c9   : > { %v4497_v58 = vpop.f32.mrb[145].mxu1 }
 0x2ca   : > { %v4498_v56 = vadd.f32 %v4497_v58, %v4496_v43  ;;  %v4499_v33 = vpop.f32.mrb[146].mxu1  ;;  %v3622_v43 = vunpack.c.l.bf16 %v3760_v63  ;;  %v6379_v58 = vld [vmem:[%s6610_s6] ss:$0 sm:$0xff] }
 0x2cb   : > { %v4500_v27 = vpop.f32.mrb[147].mxu1 }
 0x2cc   : > { %v4501_v38 = vadd.f32 %v4500_v27, %v4499_v33  ;;  %v6338_v2 = vadd.f32 %v6274_v46, %v4498_v56  ;;  %v3618_v33 = vunpack.c.l.bf16 %v6362_v9 }
 0x2ce   : > { %v6341_v15 = vadd.f32 %v6277_v52, %v4501_v38  ;;  %v3623_v38 = vunpack.c.h.bf16 %v3760_v63 }
 0x2d0   : > { %v4502_v30 = vpop.f32.mrb[148].mxu1 }
 0x2d1   : > { %v4503_v16 = vpop.f32.mrb[149].mxu1 }
 0x2d2   : > { %v4504_v22 = vadd.f32 %v4503_v16, %v4502_v30  ;;  %v4505_v5 = vpop.f32.mrb[150].mxu1  ;;  %v3619_v30 = vunpack.c.h.bf16 %v6362_v9  ;;  %v6385_v16 = vld [vmem:[%s5077_s12 + $0x28] sm:$0xff]  }
 0x2d3   : > { %v4506_v50 = vpop.f32.mrb[151].mxu1 }
 0x2d4   : > { %v4507_v51 = vadd.f32 %v4506_v50, %v4505_v5  ;;  %v6344_v59 = vadd.f32 %v6286_v49, %v4504_v22 }
 0x2d6   : > { %v6347_v54 = vadd.f32 %v6289_v45, %v4507_v51  ;;  %v3630_v51 = vunpack.c.l.bf16 %v6370_v11 }
 0x2d8   : > { %v4508_v31 = vpop.f32.mrb[152].mxu1 }
 0x2d9   : > { %v4509_v48 = vpop.f32.mrb[153].mxu1 }
 0x2da   : > { %v4510_v46 = vadd.f32 %v4509_v48, %v4508_v31  ;;  %v4511_v24 = vpop.f32.mrb[154].mxu1 }
 0x2db   : > { %v4512_v52 = vpop.f32.mrb[155].mxu1 }
 0x2dc   : > { %v4513_v12 = vadd.f32 %v4512_v52, %v4511_v24  ;;  %v6350_v34 = vadd.f32 %v6298_v55, %v4510_v46  ;;  %v3631_v46 = vunpack.c.h.bf16 %v6370_v11  ;;  %v3627_v24 = vunpack.c.h.bf16 %v6373_v21  ;;  %v6399_v52 = vld [vmem:[%s5077_s12 + $0x38] sm:$0xff]  }
 0x2de   : > { %v6353_v35 = vadd.f32 %v6301_v32, %v4513_v12  ;;  %v6367_v32 = vld [vmem:[%s6609_s5] ss:$0 sm:$0xff] }
 0x2e0   : > { %v4514_v49 = vpop.f32.mrb[156].mxu1 }
 0x2e1   : > { %v4515_v14 = vpop.f32.mrb[157].mxu1 }
 0x2e2   : > { %v4516_v45 = vadd.f32 %v4515_v14, %v4514_v49  ;;  %v4517_v53 = vpop.f32.mrb[158].mxu1 }
 0x2e3   : > { %v4518_v8 = vpop.f32.mrb[159].mxu1 }
 0x2e4   : > { %v4519_v37 = vadd.f32 %v4518_v8, %v4517_v53  ;;  %v6356_v40 = vadd.f32 %v6310_v20, %v4516_v45  ;;  %v6406_v45 = vld [vmem:[%s5077_s12 + $0x30] sm:$0xff]  }
 0x2e6   : > { %v6358_v6 = vadd.f32 %v4826_v19, %v4519_v37 }
 0x2ee   : > { %v4706_v55 = vpop.f32.mrb[0].mxu0 }
 0x2ef   : > { %v4738_v20 = vadd.f32 %v6232_v4, %v4706_v55  ;;  %v2699_v19 = vpop.f32.mrb[1].mxu0  ;;  %v6388_v4 = vld [vmem:[%s5077_s12 + $0x20] sm:$0xff]   ;;  %v3647_v55 = vunpack.c.h.bf16 %v6399_v52 }
 0x2f0   : > { %v4741_v56 = vadd.f32 %v6220_v0, %v2699_v19  ;;  %v4707_v27 = vpop.f32.mrb[2].mxu0  ;;  %v3626_v0 = vunpack.c.l.bf16 %v6373_v21 }
 0x2f1   : > { %v2867_v22 = vmul.f32 %v4738_v20, %v6367_v32  ;;  %v4744_v5 = vadd.f32 %v6235_v1, %v4707_v27  ;;  %v2702_v50 = vpop.f32.mrb[3].mxu0 }
 0x2f2   : > { %v2865_v31 = vmul.f32 %v4741_v56, %v6367_v32  ;;  %v4747_v48 = vadd.f32 %v6223_v60, %v2702_v50 }
 0x2f3   : > { %v2906_v12 = vadd.f32 %v6379_v58, %v2867_v22  ;;  %v2868_v49 = vmul.f32 %v4744_v5, %v6367_v32 }
 0x2f4   : > { %v2904_v53 = vadd.f32 %v6379_v58, %v2865_v31  ;;  %v2866_v60 = vmul.f32 %v4747_v48, %v6367_v32 }
 0x2f5   : > { %vm2938_vm3 = vcmp.gt.f32.partialorder %v2906_v12, 0.0  ;;  %v2970_v63 = vmul.f32 0.1, %v2906_v12  ;;  %v2907_v9 = vadd.f32 %v6379_v58, %v2868_v49 }
 0x2f6   : > { %vm2936_vm5 = vcmp.gt.f32.partialorder %v2904_v53, 0.0  ;;  %v2968_v20 = vmul.f32 0.1, %v2904_v53  ;;  %v2905_v19 = vadd.f32 %v6379_v58, %v2866_v60  ;;  %v4710_v56 = vpop.f32.mrb[4].mxu0 }
 0x2f7   : > { %v3002_v22 = vsel %vm2938_vm3, %v2906_v12, %v2970_v63  ;;  %vm2939_vm9 = vcmp.gt.f32.partialorder %v2907_v9, 0.0  ;;  %v2971_v5 = vmul.f32 0.1, %v2907_v9  ;;  %v4750_v50 = vadd.f32 %v6256_v10, %v4710_v56  ;;  %v2715_v31 = vpop.f32.mrb[5].mxu0  ;;  %v6432_v56 = vld [vmem:[%s5077_s12 + $0x48] sm:$0xff]  }
 0x2f8   : > { %v3000_v48 = vsel %vm2936_vm5, %v2904_v53, %v2968_v20  ;;  %vm2937_vm13 = vcmp.gt.f32.partialorder %v2905_v19, 0.0  ;;  %v2969_v37 = vmul.f32 0.1, %v2905_v19  ;;  %v4711_v49 = vpop.f32.mrb[6].mxu0  ;;  %v3098_v14 = vadd.f32 %v3622_v43, %v3002_v22 }
 0x2f9   : > { %v3003_v60 = vsel %vm2939_vm9, %v2907_v9, %v2971_v5  ;;  %v2871_v8 = vmul.f32 %v4750_v50, %v6367_v32  ;;  %v4753_v12 = vadd.f32 %v6244_v25, %v2715_v31  ;;  %v2718_v63 = vpop.f32.mrb[7].mxu0  ;;  %v4756_v10 = vadd.f32 %v6259_v47, %v4711_v49 }
 0x2fa   : > { %v3099_v27 = vadd.f32 %v3623_v38, %v3003_v60  ;;  %v3001_v1 = vsel %vm2937_vm13, %v2905_v19, %v2969_v37  ;;  %v4759_v53 = vadd.f32 %v6247_v57, %v2718_v63  ;;  %v3096_v20 = vadd.f32 %v3618_v33, %v3000_v48  ;;  %v6435_v38 = vld [vmem:[%s5077_s12 + $0x40] sm:$0xff]  }
 0x2fb   : > { %v3097_v43 = vadd.f32 %v3619_v30, %v3001_v1  ;;  %v2910_v9 = vadd.f32 %v6379_v58, %v2871_v8  ;;  %v2869_v25 = vmul.f32 %v4753_v12, %v6367_v32  ;;  %v2872_v57 = vmul.f32 %v4756_v10, %v6367_v32 }
 0x2fc   : > { %v3688_v47 = vpack.c.bf16 %v3099_v27, %v3098_v14  ;;  %v2870_v33 = vmul.f32 %v4759_v53, %v6367_v32  ;;  %v3643_v37 = vunpack.c.h.bf16 %v6406_v45  ;;  %v3654_v50 = vunpack.c.l.bf16 %v6432_v56 }
 0x2fd   : > { %v3683_v19 = vpack.c.bf16 %v3097_v43, %v3096_v20  ;;  %vm2942_vm14 = vcmp.gt.f32.partialorder %v2910_v9, 0.0  ;;  %v2974_v22 = vmul.f32 0.1, %v2910_v9  ;;  %v2908_v30 = vadd.f32 %v6379_v58, %v2869_v25 }
 0x2fe   : > { %3775 = vst [vmem:[%s6427_s27 + $0x8] sm:$0xff] %v3688_v47   ;;  %v2911_v1 = vadd.f32 %v6379_v58, %v2872_v57  ;;  %v2909_v8 = vadd.f32 %v6379_v58, %v2870_v33  ;;  %v4714_v5 = vpop.f32.mrb[8].mxu0  ;;  %v3650_v14 = vunpack.c.l.bf16 %v6435_v38  ;;  %v3655_v63 = vunpack.c.h.bf16 %v6432_v56 }
 0x2ff   : > { %3684 = vst [vmem:[%s6427_s27] sm:$0xff] %v3683_v19   ;;  %v3006_v27 = vsel %vm2942_vm14, %v2910_v9, %v2974_v22  ;;  %vm2940_vm15 = vcmp.gt.f32.partialorder %v2908_v30, 0.0  ;;  %v2972_v31 = vmul.f32 0.1, %v2908_v30  ;;  %v4762_v48 = vadd.f32 %v6280_v26, %v4714_v5  ;;  %v2731_v49 = vpop.f32.mrb[9].mxu0 }
 0x300   : > { %vm2943_vm0 = vcmp.gt.f32.partialorder %v2911_v1, 0.0  ;;  %v2975_v60 = vmul.f32 0.1, %v2911_v1  ;;  %vm2941_vm1 = vcmp.gt.f32.partialorder %v2909_v8, 0.0  ;;  %v4715_v12 = vpop.f32.mrb[10].mxu0  ;;  %v4765_v43 = vadd.f32 %v6268_v41, %v2731_v49 }
 0x301   : > { %v3004_v10 = vsel %vm2940_vm15, %v2908_v30, %v2972_v31  ;;  %v2973_v53 = vmul.f32 0.1, %v2909_v8  ;;  %v2875_v20 = vmul.f32 %v4762_v48, %v6367_v32  ;;  %v2734_v25 = vpop.f32.mrb[11].mxu0  ;;  %v3102_v9 = vadd.f32 %v3630_v51, %v3006_v27 }
 0x302   : > { %v3007_v47 = vsel %vm2943_vm0, %v2911_v1, %v2975_v60  ;;  %v4768_v26 = vadd.f32 %v6283_v39, %v4715_v12  ;;  %v4771_v57 = vadd.f32 %v6271_v7, %v2734_v25  ;;  %v2873_v30 = vmul.f32 %v4765_v43, %v6367_v32 }
 0x303   : > { %v3103_v33 = vadd.f32 %v3631_v46, %v3007_v47  ;;  %v3005_v19 = vsel %vm2941_vm1, %v2909_v8, %v2973_v53  ;;  %v2914_v22 = vadd.f32 %v6379_v58, %v2875_v20  ;;  %v3100_v41 = vadd.f32 %v3626_v0, %v3004_v10  ;;  %v6467_v8 = vld [vmem:[%s5077_s12 + $0x58] sm:$0xff]  }
 0x304   : > { %v3101_v51 = vadd.f32 %v3627_v24, %v3005_v19  ;;  %v2876_v1 = vmul.f32 %v4768_v26, %v6367_v32  ;;  %v2874_v39 = vmul.f32 %v4771_v57, %v6367_v32  ;;  %v2912_v46 = vadd.f32 %v6379_v58, %v2873_v30 }
 0x305   : > { %v3698_v7 = vpack.c.bf16 %v3103_v33, %v3102_v9  ;;  %vm2946_vm2 = vcmp.gt.f32.partialorder %v2914_v22, 0.0  ;;  %v2978_v11 = vmul.f32 0.1, %v2914_v22  ;;  %v3651_v21 = vunpack.c.h.bf16 %v6435_v38 }
 0x306   : > { %v3693_v5 = vpack.c.bf16 %v3101_v51, %v3100_v41  ;;  %v2915_v27 = vadd.f32 %v6379_v58, %v2876_v1  ;;  %v2913_v0 = vadd.f32 %v6379_v58, %v2874_v39  ;;  %v4718_v31 = vpop.f32.mrb[12].mxu0  ;;  %vm2944_vm4 = vcmp.gt.f32.partialorder %v2912_v46, 0.0  ;;  %v6487_v39 = vld [vmem:[%s5077_s12 + $0x50] sm:$0xff]  }
 0x307   : > { %3777 = vst [vmem:[%s6427_s27 + $0x18] sm:$0xff] %v3698_v7   ;;  %v3010_v24 = vsel %vm2946_vm2, %v2914_v22, %v2978_v11  ;;  %v2976_v48 = vmul.f32 0.1, %v2912_v46  ;;  %v4774_v49 = vadd.f32 %v6304_v62, %v4718_v31  ;;  %v2747_v60 = vpop.f32.mrb[13].mxu0  ;;  %v3662_v53 = vunpack.c.l.bf16 %v6467_v8 }
 0x308   : > { %3776 = vst [vmem:[%s6427_s27 + $0x10] sm:$0xff] %v3693_v5   ;;  %vm2947_vm6 = vcmp.gt.f32.partialorder %v2915_v27, 0.0  ;;  %v2979_v12 = vmul.f32 0.1, %v2915_v27  ;;  %vm2945_vm7 = vcmp.gt.f32.partialorder %v2913_v0, 0.0  ;;  %v4719_v10 = vpop.f32.mrb[14].mxu0  ;;  %v4777_v9 = vadd.f32 %v6292_v42, %v2747_v60 }
 0x309   : > { %v3008_v20 = vsel %vm2944_vm4, %v2912_v46, %v2976_v48  ;;  %v2977_v43 = vmul.f32 0.1, %v2913_v0  ;;  %v2879_v25 = vmul.f32 %v4774_v49, %v6367_v32  ;;  %v2750_v47 = vpop.f32.mrb[15].mxu0  ;;  %v6665_v26 = vunpack.c.l.bf16 %v6385_v16 }
 0x30a   : > { %v3011_v62 = vsel %vm2947_vm6, %v2915_v27, %v2979_v12  ;;  %v4780_v33 = vadd.f32 %v6307_v18, %v4719_v10  ;;  %v4783_v19 = vadd.f32 %v6295_v17, %v2750_v47  ;;  %v6666_v22 = vunpack.c.h.bf16 %v6385_v16 }
 0x30b   : > { %v3106_v57 = vadd.f32 %v6665_v26, %v3010_v24  ;;  %v3009_v41 = vsel %vm2945_vm7, %v2913_v0, %v2977_v43  ;;  %v2918_v51 = vadd.f32 %v6379_v58, %v2879_v25  ;;  %v2877_v1 = vmul.f32 %v4777_v9, %v6367_v32 }
 0x30c   : > { %v3107_v30 = vadd.f32 %v6666_v22, %v3011_v62  ;;  %v6667_v42 = vunpack.c.l.bf16 %v6388_v4  ;;  %v6668_v11 = vunpack.c.h.bf16 %v6388_v4  ;;  %v2880_v18 = vmul.f32 %v4780_v33, %v6367_v32 }
 0x30d   : > { %v2878_v17 = vmul.f32 %v4783_v19, %v6367_v32  ;;  %vm2950_vm8 = vcmp.gt.f32.partialorder %v2918_v51, 0.0  ;;  %v2982_v5 = vmul.f32 0.1, %v2918_v51  ;;  %v2916_v27 = vadd.f32 %v6379_v58, %v2877_v1 }
 0x30e   : > { %v3104_v7 = vadd.f32 %v6667_v42, %v3008_v20  ;;  %v3105_v46 = vadd.f32 %v6668_v11, %v3009_v41  ;;  %v3708_v16 = vpack.c.bf16 %v3107_v30, %v3106_v57  ;;  %v2919_v31 = vadd.f32 %v6379_v58, %v2880_v18  ;;  %v4722_v48 = vpop.f32.mrb[16].mxu0  ;;  %v6521_v18 = vld [vmem:[%s5077_s12 + $0x68] sm:$0xff]  }
 0x30f   : > { %v2917_v24 = vadd.f32 %v6379_v58, %v2878_v17  ;;  %v3658_v49 = vunpack.c.l.bf16 %v6487_v39  ;;  %v3014_v4 = vsel %vm2950_vm8, %v2918_v51, %v2982_v5  ;;  %vm2948_vm10 = vcmp.gt.f32.partialorder %v2916_v27, 0.0  ;;  %v2763_v10 = vpop.f32.mrb[17].mxu0 }
 0x310   : > { %v3703_v0 = vpack.c.bf16 %v3105_v46, %v3104_v7  ;;  %3779 = vst [vmem:[%s6427_s27 + $0x28] sm:$0xff] %v3708_v16   ;;  %v2980_v60 = vmul.f32 0.1, %v2916_v27  ;;  %v4786_v12 = vadd.f32 %v6320_v13, %v4722_v48  ;;  %vm2951_vm11 = vcmp.gt.f32.partialorder %v2919_v31, 0.0  ;;  %v4723_v43 = vpop.f32.mrb[18].mxu0 }
 0x311   : > { %v2983_v20 = vmul.f32 0.1, %v2919_v31  ;;  %vm2949_vm12 = vcmp.gt.f32.partialorder %v2917_v24, 0.0  ;;  %v3663_v25 = vunpack.c.h.bf16 %v6467_v8  ;;  %v2981_v47 = vmul.f32 0.1, %v2917_v24  ;;  %v2766_v62 = vpop.f32.mrb[19].mxu0 }
 0x312   : > { %3778 = vst [vmem:[%s6427_s27 + $0x20] sm:$0xff] %v3703_v0   ;;  %v3012_v9 = vsel %vm2948_vm10, %v2916_v27, %v2980_v60  ;;  %v2883_v26 = vmul.f32 %v4786_v12, %v6367_v32  ;;  %v4789_v57 = vadd.f32 %v6314_v36, %v2763_v10  ;;  %v6669_v33 = vunpack.c.l.bf16 %v6399_v52 }
 0x313   : > { %v3015_v13 = vsel %vm2951_vm11, %v2919_v31, %v2983_v20  ;;  %v4792_v22 = vadd.f32 %v6323_v23, %v4723_v43  ;;  %v4795_v30 = vadd.f32 %v6317_v29, %v2766_v62  ;;  %v3013_v51 = vsel %vm2949_vm12, %v2917_v24, %v2981_v47 }
 0x314   : > { %v3110_v19 = vadd.f32 %v6669_v33, %v3014_v4  ;;  %v3111_v41 = vadd.f32 %v3647_v55, %v3015_v13  ;;  %v2922_v1 = vadd.f32 %v6379_v58, %v2883_v26  ;;  %v2881_v42 = vmul.f32 %v4789_v57, %v6367_v32 }
 0x315   : > { %v6670_v36 = vunpack.c.l.bf16 %v6406_v45  ;;  %v3109_v11 = vadd.f32 %v3643_v37, %v3013_v51  ;;  %v2884_v46 = vmul.f32 %v4792_v22, %v6367_v32  ;;  %v2882_v23 = vmul.f32 %v4795_v30, %v6367_v32  ;;  %v6541_v22 = vld [vmem:[%s5077_s12 + $0x60] sm:$0xff]  }
 0x316   : > { %v3718_v29 = vpack.c.bf16 %v3111_v41, %v3110_v19  ;;  %vm2954_vm3 = vcmp.gt.f32.partialorder %v2922_v1, 0.0  ;;  %v2986_v52 = vmul.f32 0.1, %v2922_v1  ;;  %v2920_v55 = vadd.f32 %v6379_v58, %v2881_v42  ;;  %v4726_v27 = vpop.f32.mrb[20].mxu0 }
 0x317   : > { %v3108_v7 = vadd.f32 %v6670_v36, %v3012_v9  ;;  %v2923_v16 = vadd.f32 %v6379_v58, %v2884_v46  ;;  %v2921_v5 = vadd.f32 %v6379_v58, %v2882_v23  ;;  %v3659_v45 = vunpack.c.h.bf16 %v6487_v39  ;;  %v2779_v24 = vpop.f32.mrb[21].mxu0 }
 0x318   : > { %3781 = vst [vmem:[%s6427_s27 + $0x38] sm:$0xff] %v3718_v29   ;;  %v3018_v37 = vsel %vm2954_vm3, %v2922_v1, %v2986_v52  ;;  %vm2952_vm5 = vcmp.gt.f32.partialorder %v2920_v55, 0.0  ;;  %v2984_v0 = vmul.f32 0.1, %v2920_v55  ;;  %v4798_v31 = vadd.f32 %v6332_v3, %v4726_v27  ;;  %v4727_v4 = vpop.f32.mrb[22].mxu0 }
 0x319   : > { %v3713_v17 = vpack.c.bf16 %v3109_v11, %v3108_v7  ;;  %vm2955_vm9 = vcmp.gt.f32.partialorder %v2923_v16, 0.0  ;;  %v2987_v48 = vmul.f32 0.1, %v2923_v16  ;;  %vm2953_vm13 = vcmp.gt.f32.partialorder %v2921_v5, 0.0  ;;  %v2782_v9 = vpop.f32.mrb[23].mxu0 }
 0x31a   : > { %v3670_v60 = vunpack.c.l.bf16 %v6521_v18  ;;  %v3016_v12 = vsel %vm2952_vm5, %v2920_v55, %v2984_v0  ;;  %v2985_v10 = vmul.f32 0.1, %v2921_v5  ;;  %v2887_v20 = vmul.f32 %v4798_v31, %v6367_v32 }
 0x31b   : > { %3780 = vst [vmem:[%s6427_s27 + $0x30] sm:$0xff] %v3713_v17   ;;  %v4801_v43 = vadd.f32 %v6326_v28, %v2779_v24  ;;  %v3114_v47 = vadd.f32 %v3654_v50, %v3018_v37  ;;  %v3019_v3 = vsel %vm2955_vm9, %v2923_v16, %v2987_v48  ;;  %v4804_v26 = vadd.f32 %v6335_v44, %v4727_v4 }
 0x31c   : > { %v4807_v57 = vadd.f32 %v6329_v61, %v2782_v9  ;;  %v3115_v62 = vadd.f32 %v3655_v63, %v3019_v3  ;;  %v3017_v33 = vsel %vm2953_vm13, %v2921_v5, %v2985_v10  ;;  %v2926_v19 = vadd.f32 %v6379_v58, %v2887_v20 }
 0x31d   : > { %v2885_v13 = vmul.f32 %v4801_v43, %v6367_v32  ;;  %v3112_v28 = vadd.f32 %v3650_v14, %v3016_v12  ;;  %v3113_v50 = vadd.f32 %v3651_v21, %v3017_v33  ;;  %v2888_v44 = vmul.f32 %v4804_v26, %v6367_v32  ;;  %v3774_v12 = vld [vmem:[%s5077_s12 + $0x78] sm:$0xff]  }
 0x31e   : > { %v2886_v61 = vmul.f32 %v4807_v57, %v6367_v32  ;;  %v3728_v56 = vpack.c.bf16 %v3115_v62, %v3114_v47  ;;  %vm2958_vm14 = vcmp.gt.f32.partialorder %v2926_v19, 0.0  ;;  %v2990_v63 = vmul.f32 0.1, %v2926_v19  ;;  %v4730_v42 = vpop.f32.mrb[24].mxu0 }
 0x31f   : > { %v2924_v30 = vadd.f32 %v6379_v58, %v2885_v13  ;;  %v3723_v41 = vpack.c.bf16 %v3113_v50, %v3112_v28  ;;  %v2927_v51 = vadd.f32 %v6379_v58, %v2888_v44  ;;  %v3666_v14 = vunpack.c.l.bf16 %v6541_v22  ;;  %v2795_v7 = vpop.f32.mrb[25].mxu0 }
 0x320   : > { %v2925_v1 = vadd.f32 %v6379_v58, %v2886_v61  ;;  %3783 = vst [vmem:[%s6427_s27 + $0x48] sm:$0xff] %v3728_v56   ;;  %v3022_v38 = vsel %vm2958_vm14, %v2926_v19, %v2990_v63  ;;  %v4810_v36 = vadd.f32 %v6344_v59, %v4730_v42  ;;  %v4731_v46 = vpop.f32.mrb[26].mxu0  ;;  %v3671_v23 = vunpack.c.h.bf16 %v6521_v18 }
 0x321   : > { %vm2956_vm15 = vcmp.gt.f32.partialorder %v2924_v30, 0.0  ;;  %v2988_v21 = vmul.f32 0.1, %v2924_v30  ;;  %3782 = vst [vmem:[%s6427_s27 + $0x40] sm:$0xff] %v3723_v41   ;;  %vm2959_vm0 = vcmp.gt.f32.partialorder %v2927_v51, 0.0  ;;  %v4813_v17 = vadd.f32 %v6338_v2, %v2795_v7  ;;  %v2798_v16 = vpop.f32.mrb[27].mxu0 }
 0x322   : > { %v2991_v11 = vmul.f32 0.1, %v2927_v51  ;;  %vm2957_vm1 = vcmp.gt.f32.partialorder %v2925_v1, 0.0  ;;  %v2989_v52 = vmul.f32 0.1, %v2925_v1  ;;  %v2891_v55 = vmul.f32 %v4810_v36, %v6367_v32 }
 0x323   : > { %v3020_v29 = vsel %vm2956_vm15, %v2924_v30, %v2988_v21  ;;  %v3118_v5 = vadd.f32 %v3662_v53, %v3022_v38  ;;  %v4816_v27 = vadd.f32 %v6347_v54, %v4731_v46  ;;  %v4819_v37 = vadd.f32 %v6341_v15, %v2798_v16 }
 0x324   : > { %v3023_v59 = vsel %vm2959_vm0, %v2927_v51, %v2991_v11  ;;  %v3021_v31 = vsel %vm2957_vm1, %v2925_v1, %v2989_v52  ;;  %v2930_v24 = vadd.f32 %v6379_v58, %v2891_v55  ;;  %v2889_v48 = vmul.f32 %v4813_v17, %v6367_v32  ;;  %v3773_v1 = vld [vmem:[%s5077_s12 + $0x70] sm:$0xff]  }
 0x325   : > { %v3119_v0 = vadd.f32 %v3663_v25, %v3023_v59  ;;  %v3116_v2 = vadd.f32 %v3658_v49, %v3020_v29  ;;  %v3117_v53 = vadd.f32 %v3659_v45, %v3021_v31  ;;  %v2892_v4 = vmul.f32 %v4816_v27, %v6367_v32 }
 0x326   : > { %v2890_v54 = vmul.f32 %v4819_v37, %v6367_v32  ;;  %vm2962_vm2 = vcmp.gt.f32.partialorder %v2930_v24, 0.0  ;;  %v2994_v8 = vmul.f32 0.1, %v2930_v24  ;;  %v2928_v25 = vadd.f32 %v6379_v58, %v2889_v48  ;;  %v4734_v39 = vpop.f32.mrb[28].mxu0 }
 0x327   : > { %v3738_v15 = vpack.c.bf16 %v3119_v0, %v3118_v5  ;;  %v3733_v10 = vpack.c.bf16 %v3117_v53, %v3116_v2  ;;  %v2931_v20 = vadd.f32 %v6379_v58, %v2892_v4  ;;  %v3667_v49 = vunpack.c.h.bf16 %v6541_v22  ;;  %v2811_v3 = vpop.f32.mrb[29].mxu0 }
 0x328   : > { %v2929_v43 = vadd.f32 %v6379_v58, %v2890_v54  ;;  %v3026_v45 = vsel %vm2962_vm2, %v2930_v24, %v2994_v8  ;;  %vm2960_vm4 = vcmp.gt.f32.partialorder %v2928_v25, 0.0  ;;  %v2992_v9 = vmul.f32 0.1, %v2928_v25  ;;  %v4735_v62 = vpop.f32.mrb[30].mxu0 }
 0x329   : > { %3785 = vst [vmem:[%s6427_s27 + $0x58] sm:$0xff] %v3738_v15   ;;  %v4822_v47 = vadd.f32 %v6356_v40, %v4734_v39  ;;  %3784 = vst [vmem:[%s6427_s27 + $0x50] sm:$0xff] %v3733_v10   ;;  %vm2963_vm6 = vcmp.gt.f32.partialorder %v2931_v20, 0.0  ;;  %v2995_v26 = vmul.f32 0.1, %v2931_v20  ;;  %v3678_v57 = vunpack.c.l.bf16 %v3774_v12  ;;  %v2814_v50 = vpop.f32.mrb[31].mxu0 }
 0x32a   : > { %vm2961_vm7 = vcmp.gt.f32.partialorder %v2929_v43, 0.0  ;;  %v3024_v33 = vsel %vm2960_vm4, %v2928_v25, %v2992_v9  ;;  %v2993_v19 = vmul.f32 0.1, %v2929_v43  ;;  %v4825_v28 = vadd.f32 %v6350_v34, %v2811_v3 }
 0x32b   : > { %v2895_v13 = vmul.f32 %v4822_v47, %v6367_v32  ;;  %v3122_v44 = vadd.f32 %v3670_v60, %v3026_v45  ;;  %v3027_v61 = vsel %vm2963_vm6, %v2931_v20, %v2995_v26  ;;  %v4828_v40 = vadd.f32 %v6358_v6, %v4735_v62 }
 0x32c   : > { %v4831_v56 = vadd.f32 %v6353_v35, %v2814_v50  ;;  %v3123_v63 = vadd.f32 %v3671_v23, %v3027_v61  ;;  %v3025_v30 = vsel %vm2961_vm7, %v2929_v43, %v2993_v19  ;;  %v2893_v51 = vmul.f32 %v4825_v28, %v6367_v32 }
 0x32d   : > { %v2934_v41 = vadd.f32 %v6379_v58, %v2895_v13  ;;  %v3120_v34 = vadd.f32 %v3666_v14, %v3024_v33  ;;  %v3121_v42 = vadd.f32 %v3667_v49, %v3025_v30  ;;  %v2896_v18 = vmul.f32 %v4828_v40, %v6367_v32 }
 0x32e   : > { %v2894_v60 = vmul.f32 %v4831_v56, %v6367_v32  ;;  %v3748_v6 = vpack.c.bf16 %v3123_v63, %v3122_v44  ;;  %v2932_v38 = vadd.f32 %v6379_v58, %v2893_v51  ;;  %v3674_v36 = vunpack.c.l.bf16 %v3773_v1 }
 0x32f   : > { %vm2966_vm8 = vcmp.gt.f32.partialorder %v2934_v41, 0.0  ;;  %v2998_v35 = vmul.f32 0.1, %v2934_v41  ;;  %v3743_v21 = vpack.c.bf16 %v3121_v42, %v3120_v34  ;;  %v2935_v7 = vadd.f32 %v6379_v58, %v2896_v18 }
 0x330   : > { %v2933_v11 = vadd.f32 %v6379_v58, %v2894_v60  ;;  %3787 = vst [vmem:[%s6427_s27 + $0x68] sm:$0xff] %v3748_v6   ;;  %vm2964_vm10 = vcmp.gt.f32.partialorder %v2932_v38, 0.0  ;;  %v2996_v22 = vmul.f32 0.1, %v2932_v38  ;;  %v3679_v14 = vunpack.c.h.bf16 %v3774_v12 }
 0x331   : > { %v3675_v46 = vunpack.c.h.bf16 %v3773_v1  ;;  %3786 = vst [vmem:[%s6427_s27 + $0x60] sm:$0xff] %v3743_v21   ;;  %v3030_v32 = vsel %vm2966_vm8, %v2934_v41, %v2998_v35  ;;  %vm2967_vm11 = vcmp.gt.f32.partialorder %v2935_v7, 0.0  ;;  %v2999_v23 = vmul.f32 0.1, %v2935_v7 }
 0x332   : > { %vm2965_vm12 = vcmp.gt.f32.partialorder %v2933_v11, 0.0  ;;  %v3028_v29 = vsel %vm2964_vm10, %v2932_v38, %v2996_v22  ;;  %v2997_v52 = vmul.f32 0.1, %v2933_v11  ;;  %v3126_v17 = vadd.f32 %v3678_v57, %v3030_v32 }
 0x333   : > { %v3031_v55 = vsel %vm2967_vm11, %v2935_v7, %v2999_v23  ;;  %v3124_v59 = vadd.f32 %v3674_v36, %v3028_v29 }
 0x334   : > { %v3127_v16 = vadd.f32 %v3679_v14, %v3031_v55  ;;  %v3029_v5 = vsel %vm2965_vm12, %v2933_v11, %v2997_v52 }
 0x335   : > { %v3125_v58 = vadd.f32 %v3675_v46, %v3029_v5 }
 0x336   : > { %v3758_v27 = vpack.c.bf16 %v3127_v16, %v3126_v17 }
 0x337   : > { %v3753_v37 = vpack.c.bf16 %v3125_v58, %v3124_v59 }
 0x338   : > { %3789 = vst [vmem:[%s6427_s27 + $0x78] sm:$0xff] %v3758_v27  }
 0x339   : > { %3788 = vst [vmem:[%s6427_s27 + $0x70] sm:$0xff] %v3753_v37  }
 0x33a PF: > { %s17_s24 = sadd.s32 1, %s5008_s24  }
 0x33b   : > { %p14_p4 = scmp.ge.s32.totalorder %s17_s24, 4  }
 0x33d   :  { %16 = sbr.rel (!%p14_p4) target bundleno = 1 (0x1), region = 83 }

</bundles_post_ra>
